<compile_context>
chip_gen: v5e
topology: v5e:2x2
jax: 0.10.0
libtpu: 0.0.40
codegen_flags: <defaults>
</compile_context>

<pallas_src>
import functools

import jax
import jax.numpy as jnp
from jax.experimental import pallas as pl
from jax.experimental.pallas import tpu as pltpu

D_MODEL = 32
NUM_HEADS = 4
HEAD_DIM = D_MODEL // NUM_HEADS
RPE_SIZE = 10          # num_embeddings of the learnable relative positional embedding
LN_EPS = 1e-5


def _layer_norm(x, gamma, beta):
    mu = jnp.mean(x, axis=-1, keepdims=True)
    var = jnp.mean(jnp.square(x - mu), axis=-1, keepdims=True)
    return (x - mu) * jax.lax.rsqrt(var + LN_EPS) * gamma + beta


def _lrpe_kernel(has_factors, *refs):
    D, H, Ch, P = D_MODEL, NUM_HEADS, HEAD_DIM, RPE_SIZE
    if has_factors:
        (xq_ref, k_ref, vp_ref, idx_ref, fac_ref, msk_ref,
         wq_ext_ref, bq_ext_ref, w1_ref, bf1_ref, w2_ref, vec_ref,
         out_ref, attn_ref) = refs
    else:
        (xq_ref, k_ref, vp_ref, idx_ref, msk_ref,
         wq_ext_ref, bq_ext_ref, w1_ref, bf1_ref, w2_ref, vec_ref,
         out_ref, attn_ref) = refs
        fac_ref = None

    xq = xq_ref[0]                          # (TN, D)  f32
    k = k_ref[0]                            # (M, D)   bf16 (precomputed K projection)
    vp = vp_ref[0]                          # (M, H*D) bf16 (precomputed V with Wo folded in)
    idx = idx_ref[0].astype(jnp.int32)      # (TN, M)  int8 in HBM, widened once here
    msk = msk_ref[0]                        # (1, M)   1.0 => masked key
    tn = xq.shape[0]
    m = k.shape[0]

    vecs = vec_ref[...]                     # (8, D) packed small vectors
    bo, g1, b1 = vecs[0:1], vecs[1:2], vecs[2:3]
    bf2, g2, b2 = vecs[3:4], vecs[4:5], vecs[5:6]

    # Fused query projection + relative-position bank: one (TN,D)x(D,D+H*P) bf16 MXU pass.
    q_ext = jnp.dot(xq.astype(jnp.bfloat16), wq_ext_ref[...],
                    preferred_element_type=jnp.float32) + bq_ext_ref[...]
    q = q_ext[:, :D]                        # (TN, D)
    spf = q_ext[:, D:]                      # (TN, H*P) positional scores per (head, bucket)

    inv_sqrt = 1.0 / (Ch ** 0.5)
    # finite additive mask (no NaN rows when a row is fully masked)
    neg = jnp.where(jnp.broadcast_to(msk, (tn, m)) > 0.5, -1e30, 0.0)
    if has_factors:
        fs = fac_ref[0] * inv_sqrt          # hoisted out of the head loop

    # Content scores q.k^T for all heads (bf16 operands, f32 accumulation).
    q_bf = q.astype(jnp.bfloat16)
    scores = []
    for h in range(H):
        qh = q_bf[:, h * Ch:(h + 1) * Ch]
        kh = k[:, h * Ch:(h + 1) * Ch]
        scores.append(jax.lax.dot_general(qh, kh, (((1,), (1,)), ((), ())),
                                          preferred_element_type=jnp.float32))

    # Relative-position gather via compare/select: the P bucket compares are done ONCE per
    # grid step (p-outer loop) and reused across the H heads (no (TN,M,P) one-hot tensor).
    for p in range(P):
        bucket = idx == p
        for h in range(H):
            scores[h] = scores[h] + jnp.where(bucket, spf[:, h * P + p:h * P + p + 1], 0.0)

    hidden = jnp.zeros((tn, D), jnp.float32)
    for h in range(H):
        if has_factors:
            s = fs * scores[h] + neg
        else:
            s = scores[h] * inv_sqrt + neg
        # softmax over keys; divide routed to the EUP via approximate reciprocal
        s_max = jnp.max(s, axis=-1, keepdims=True)
        e = jnp.exp(s - s_max)
        attn = e * pl.reciprocal(jnp.sum(e, axis=-1, keepdims=True), approx=True)
        attn_q = attn.astype(attn_ref.dtype)
        attn_ref[0, h] = attn_q             # per-head lane-dense store (no stack/concat)
        # context with Wo already folded into V': hidden += attn_h @ V'_h
        hidden = hidden + jnp.dot(attn_q, vp[:, h * D:(h + 1) * D],
                                  preferred_element_type=jnp.float32)

    # attention output bias + residual + LayerNorm (LRPEAttentionLayer)
    x1 = _layer_norm(hidden + bo + xq, g1, b1)

    # AttentionOutput: expand -> ReLU -> squeeze -> residual -> LayerNorm
    ff = jnp.maximum(jnp.dot(x1.astype(jnp.bfloat16), w1_ref[...],
                             preferred_element_type=jnp.float32) + bf1_ref[...], 0.0)
    ff = jnp.dot(ff.astype(jnp.bfloat16), w2_ref[...],
                 preferred_element_type=jnp.float32) + bf2
    out_ref[0] = _layer_norm(x1 + ff, g2, b2)


def _pick_tile(batch, n, m, has_factors):
    """Query-tile size + vmem limit derived from the actual block sizes (v7x-safe)."""
    D, H = D_MODEL, NUM_HEADS
    try:
        vmem_cap = int(pltpu.get_tpu_info().vmem_capacity_bytes)
    except Exception:
        vmem_cap = 64 * 1024 * 1024                     # assume the smallest (v7x per-core)
    budget = int(0.55 * vmem_cap)

    # resident (memory-side) blocks: bf16 K (M,D), bf16 V' (M,H*D), mask, packed weights
    resident = 2 * (m * D * 2 + m * H * D * 2 + m * 4) + (256 << 10)

    def step_bytes(tn):                                 # double-buffered per-step blocks
        io = 2 * (tn * D * 4        # xq
                  + tn * m * 1      # int8 bucket ids
                  + H * tn * m * 2  # bf16 attention-prob output
                  + tn * D * 4)     # output states
        if has_factors:
            io += 2 * tn * m * 4
        tmp = 8 * tn * m * 4        # in-kernel score/prob temporaries (f32)
        return io + tmp

    tn = n
    for t in (512, 256, 128, 64, 32, 16, 8):
        if n % t == 0 and resident + step_bytes(t) <= budget:
            tn = t
            break
    # v7x has 2 TensorCores sharing the parallel grid axes: keep the grid evenly splittable.
    if (batch % 2 == 1 and (n // tn) % 2 == 1 and tn >= 16
            and (tn // 2) % 8 == 0 and n % (tn // 2) == 0):
        tn //= 2
    vmem_limit = max(32 << 20,
                     min(int(0.9 * vmem_cap), resident + step_bytes(tn) + (8 << 20)))
    return tn, int(vmem_limit)


def lrpe_transformer_layer(input_states, memory_states, position_states, params,
                           memory_masks=None, attention_factors=None,
                           attn_dtype=jnp.bfloat16):
    f32, bf16 = jnp.float32, jnp.bfloat16
    input_states = input_states.astype(f32)
    memory_states = memory_states.astype(f32)
    B, N, D = input_states.shape
    M = memory_states.shape[1]
    H, Ch, P = NUM_HEADS, HEAD_DIM, RPE_SIZE
    has_factors = attention_factors is not None

    # ---- host-side weight packing / glue (done once, outside the kernel) ----
    # LearnablePositionalEmbedding bank = LayerNorm(embedding table), 'p (h c) -> h p c'
    emb = _layer_norm(params["emb_table"], params["emb_ln_g"], params["emb_ln_b"])
    emb_bank = emb.reshape(P, H, Ch).transpose(1, 0, 2)             # (H, P, Ch)
    # block-diagonal positional projection folded into Wq: q @ w_pos = all (head,bucket) scores
    w_pos = jnp.zeros((D, H * P), f32)
    for h in range(H):
        w_pos = w_pos.at[h * Ch:(h + 1) * Ch, h * P:(h + 1) * P].set(emb_bank[h].T)
    wq_ext = jnp.concatenate([params["wq"], params["wq"] @ w_pos], axis=1).astype(bf16)
    bq_ext = jnp.concatenate([params["bq"], params["bq"] @ w_pos], axis=1).astype(f32)

    # fold Wo into V per head: V'[:, h*D:(h+1)*D] = (xm @ Wv_h + bv_h) @ Wo_h
    wvo = jnp.concatenate(
        [params["wv"][:, h * Ch:(h + 1) * Ch] @ params["wo"][h * Ch:(h + 1) * Ch, :]
         for h in range(H)], axis=1)                                 # (D, H*D)
    bvo = jnp.concatenate(
        [params["bv"][:, h * Ch:(h + 1) * Ch] @ params["wo"][h * Ch:(h + 1) * Ch, :]
         for h in range(H)], axis=1)                                 # (1, H*D)

    # memory-side projections computed ONCE per batch (resident across query tiles in-kernel)
    k_proj = (memory_states @ params["wk"] + params["bk"]).astype(bf16)   # (B, M, D)
    v_proj = (memory_states @ wvo + bvo).astype(bf16)                     # (B, M, H*D)

    vec_slab = jnp.concatenate(
        [params["bo"], params["g1"], params["b1"],
         params["bf2"], params["g2"], params["b2"],
         jnp.zeros((2, D), f32)], axis=0).astype(f32)                     # (8, D)

    weights = [wq_ext, bq_ext,
               params["w1"].astype(bf16), params["bf1"].astype(f32),
               params["w2"].astype(bf16), vec_slab]

    idx_i8 = position_states.astype(jnp.int8)            # bucket ids 0..P-1 fit in int8
    if memory_masks is None:
        msk = jnp.zeros((B, 1, M), f32)
    else:
        msk = memory_masks.astype(f32)[:, None, :]        # (B, 1, M)

    TN, vmem_limit = _pick_tile(B, N, M, has_factors)
    grid = (B, N // TN)

    in_specs = [
        pl.BlockSpec((1, TN, D), lambda b, i: (b, i, 0)),        # input_states tile
        pl.BlockSpec((1, M, D), lambda b, i: (b, 0, 0)),         # K      (resident over N-tiles)
        pl.BlockSpec((1, M, H * D), lambda b, i: (b, 0, 0)),     # V'     (resident over N-tiles)
        pl.BlockSpec((1, TN, M), lambda b, i: (b, i, 0)),        # bucket ids (int8)
    ]
    args = [input_states, k_proj, v_proj, idx_i8]
    if has_factors:
        in_specs.append(pl.BlockSpec((1, TN, M), lambda b, i: (b, i, 0)))
        args.append(attention_factors.astype(f32))
    in_specs.append(pl.BlockSpec((1, 1, M), lambda b, i: (b, 0, 0)))   # key mask
    args.append(msk)
    in_specs += [pl.BlockSpec(w.shape, lambda b, i, _nd=w.ndim: (0,) * _nd) for w in weights]
    args += weights

    out_shape = (jax.ShapeDtypeStruct((B, N, D), f32),
                 jax.ShapeDtypeStruct((B, H, N, M), attn_dtype))
    out_specs = [pl.BlockSpec((1, TN, D), lambda b, i: (b, i, 0)),
                 pl.BlockSpec((1, H, TN, M), lambda b, i: (b, 0, i, 0))]

    grid_spec = pltpu.PrefetchScalarGridSpec(
        num_scalar_prefetch=0, grid=grid, in_specs=in_specs, out_specs=out_specs)

    fn = pl.pallas_call(
        functools.partial(_lrpe_kernel, has_factors),
        out_shape=out_shape,
        grid_spec=grid_spec,
        compiler_params=pltpu.CompilerParams(
            dimension_semantics=("parallel", "parallel"),
            vmem_limit_bytes=vmem_limit),
    )
    return fn(*args)


def init_params(key):
    D = D_MODEL
    ks = jax.random.split(key, 16)

    def w(k, shape, scale=0.1):
        return scale * jax.random.normal(k, shape, jnp.float32)

    return dict(
        wq=w(ks[0], (D, D)), bq=w(ks[1], (1, D)),
        wk=w(ks[2], (D, D)), bk=w(ks[3], (1, D)),
        wv=w(ks[4], (D, D)), bv=w(ks[5], (1, D)),
        emb_table=w(ks[6], (RPE_SIZE, D), 1.0),
        emb_ln_g=jnp.ones((1, D), jnp.float32), emb_ln_b=jnp.zeros((1, D), jnp.float32),
        wo=w(ks[7], (D, D)), bo=w(ks[8], (1, D)),
        g1=jnp.ones((1, D), jnp.float32), b1=jnp.zeros((1, D), jnp.float32),
        w1=w(ks[9], (D, 2 * D)), bf1=w(ks[10], (1, 2 * D)),
        w2=w(ks[11], (2 * D, D)), bf2=w(ks[12], (1, D)),
        g2=jnp.ones((1, D), jnp.float32), b2=jnp.zeros((1, D), jnp.float32),
    )


def reference(xq, xm, idx, factors, masks, params):
    """Pure-JAX mirror of the PyTorch forward, used only for validation."""
    B, N, D = xq.shape
    M = xm.shape[1]
    H, Ch, P = NUM_HEADS, HEAD_DIM, RPE_SIZE
    q = xq @ params["wq"] + params["bq"]
    k = xm @ params["wk"] + params["bk"]
    v = xm @ params["wv"] + params["bv"]
    qh = q.reshape(B, N, H, Ch).transpose(0, 2, 1, 3)
    kh = k.reshape(B, M, H, Ch).transpose(0, 2, 1, 3)
    vh = v.reshape(B, M, H, Ch).transpose(0, 2, 1, 3)
    emb = _layer_norm(params["emb_table"], params["emb_ln_g"], params["emb_ln_b"])
    emb_bank = emb.reshape(P, H, Ch).transpose(1, 0, 2)
    sp_full = jnp.einsum("bhnc,hpc->bhnp", qh, emb_bank)
    idx_e = jnp.broadcast_to(idx[:, None, :, :].astype(jnp.int32), (B, H, N, M))
    sp = jnp.take_along_axis(sp_full, idx_e, axis=-1)
    se = jnp.einsum("bhnc,bhmc->bhnm", qh, kh)
    s = (se + sp) / (Ch ** 0.5)
    s = factors[:, None] * s
    s = jnp.where(masks[:, None, None, :] > 0.5, -jnp.inf, s)
    attn = jax.nn.softmax(s, axis=-1)
    ctx = jnp.einsum("bhnm,bhmc->bhnc", attn, vh)
    hidden = ctx.transpose(0, 2, 1, 3).reshape(B, N, D)
    hidden = hidden @ params["wo"] + params["bo"]
    x1 = _layer_norm(hidden + xq, params["g1"], params["b1"])
    ff = jnp.maximum(x1 @ params["w1"] + params["bf1"], 0.0)
    ff = ff @ params["w2"] + params["bf2"]
    out = _layer_norm(x1 + ff, params["g2"], params["b2"])
    return out, attn


if __name__ == "__main__":
    # TODO(synk): dropout layers are identity in eval mode (dropout=None) and are omitted.
    key = jax.random.PRNGKey(0)
    k_p, k_xq, k_xm, k_idx, k_fac = jax.random.split(key, 5)

    B, N, M = 2, 8, 8
    params = init_params(k_p)
    input_states = jax.random.normal(k_xq, (B, N, D_MODEL), jnp.float32)
    memory_states = jax.random.normal(k_xm, (B, M, D_MODEL), jnp.float32)
    position_states = jax.random.randint(k_idx, (B, N, M), 0, RPE_SIZE, jnp.int32)
    attention_factors = 0.5 + jax.random.uniform(k_fac, (B, N, M), jnp.float32)
    memory_masks = jnp.zeros((B, M), jnp.float32).at[0, M - 1].set(1.0)

    out, attn = lrpe_transformer_layer(
        input_states, memory_states, position_states, params,
        memory_masks=memory_masks, attention_factors=attention_factors)
    jax.block_until_ready((out, attn))

    ref_out, ref_attn = reference(input_states, memory_states, position_states,
                                  attention_factors, memory_masks, params)
    assert out.shape == (B, N, D_MODEL) and attn.shape == (B, NUM_HEADS, N, M)
    assert jnp.allclose(out, ref_out, atol=5e-2, rtol=5e-2), "output mismatch vs reference"
    assert jnp.allclose(attn.astype(jnp.float32), ref_attn, atol=5e-2, rtol=5e-2), \
        "attention mismatch vs reference"

    # also exercise the specialized path (no attention_factors, no mask)
    out2, attn2 = lrpe_transformer_layer(input_states, memory_states, position_states, params)
    jax.block_until_ready((out2, attn2))
    ref_out2, ref_attn2 = reference(input_states, memory_states, position_states,
                                    jnp.ones((B, N, M), jnp.float32),
                                    jnp.zeros((B, M), jnp.float32), params)
    assert jnp.allclose(out2, ref_out2, atol=5e-2, rtol=5e-2), "no-factor output mismatch"
    assert jnp.allclose(attn2.astype(jnp.float32), ref_attn2, atol=5e-2, rtol=5e-2), \
        "no-factor attention mismatch"

    print("KERNEL_OK")
</pallas_src>

<mosaic_0001>
module attributes {stable_mosaic.version = 11 : i64} {
  func.func @_lrpe_kernel(%arg0: i32, %arg1: i32, %arg2: memref<1x8x32xf32, #tpu.memory_space<vmem>>, %arg3: memref<1x8x32xbf16, #tpu.memory_space<vmem>>, %arg4: memref<1x8x128xbf16, #tpu.memory_space<vmem>>, %arg5: memref<1x8x8xi8, #tpu.memory_space<vmem>>, %arg6: memref<1x8x8xf32, #tpu.memory_space<vmem>>, %arg7: memref<1x1x8xf32, #tpu.memory_space<vmem>>, %arg8: memref<32x72xbf16, #tpu.memory_space<vmem>>, %arg9: memref<1x72xf32, #tpu.memory_space<vmem>>, %arg10: memref<32x64xbf16, #tpu.memory_space<vmem>>, %arg11: memref<1x64xf32, #tpu.memory_space<vmem>>, %arg12: memref<64x32xbf16, #tpu.memory_space<vmem>>, %arg13: memref<8x32xf32, #tpu.memory_space<vmem>>, %arg14: memref<1x8x32xf32, #tpu.memory_space<vmem>>, %arg15: memref<1x4x8x8xbf16, #tpu.memory_space<vmem>>) attributes {dimension_semantics = [#tpu.dimension_semantics<parallel>, #tpu.dimension_semantics<parallel>], iteration_bounds = array<i64: 2, 1>, scalar_prefetch = 0 : i64, scratch_operands = 0 : i64, tpu.core_type = #tpu.core_type<tc>, window_params = [{transform_indices = @transform_0, window_bounds = array<i64: 1, 8, 32>}, {transform_indices = @transform_1, window_bounds = array<i64: 1, 8, 32>}, {transform_indices = @transform_2, window_bounds = array<i64: 1, 8, 128>}, {transform_indices = @transform_3, window_bounds = array<i64: 1, 8, 8>}, {transform_indices = @transform_4, window_bounds = array<i64: 1, 8, 8>}, {transform_indices = @transform_5, window_bounds = array<i64: 1, 1, 8>}, {pipeline_mode = #tpu.pipeline_mode<synchronous>, transform_indices = @transform_6, window_bounds = array<i64: 32, 72>}, {pipeline_mode = #tpu.pipeline_mode<synchronous>, transform_indices = @transform_7, window_bounds = array<i64: 1, 72>}, {pipeline_mode = #tpu.pipeline_mode<synchronous>, transform_indices = @transform_8, window_bounds = array<i64: 32, 64>}, {pipeline_mode = #tpu.pipeline_mode<synchronous>, transform_indices = @transform_9, window_bounds = array<i64: 1, 64>}, {pipeline_mode = #tpu.pipeline_mode<synchronous>, transform_indices = @transform_10, window_bounds = array<i64: 64, 32>}, {pipeline_mode = #tpu.pipeline_mode<synchronous>, transform_indices = @transform_11, window_bounds = array<i64: 8, 32>}, {transform_indices = @transform_12, window_bounds = array<i64: 1, 8, 32>}, {transform_indices = @transform_13, window_bounds = array<i64: 1, 4, 8, 8>}]} {
    %c0 = arith.constant 0 : index
    %c0_0 = arith.constant 0 : index
    %c0_1 = arith.constant 0 : index
    %0 = vector.load %arg2[%c0, %c0_0, %c0_1] : memref<1x8x32xf32, #tpu.memory_space<vmem>>, vector<1x8x32xf32>
    %1 = vector.shape_cast %0 : vector<1x8x32xf32> to vector<8x32xf32>
    %c0_2 = arith.constant 0 : index
    %c0_3 = arith.constant 0 : index
    %c0_4 = arith.constant 0 : index
    %2 = vector.load %arg3[%c0_2, %c0_3, %c0_4] : memref<1x8x32xbf16, #tpu.memory_space<vmem>>, vector<1x8x32xbf16>
    %3 = vector.shape_cast %2 : vector<1x8x32xbf16> to vector<8x32xbf16>
    %c0_5 = arith.constant 0 : index
    %c0_6 = arith.constant 0 : index
    %c0_7 = arith.constant 0 : index
    %4 = vector.load %arg4[%c0_5, %c0_6, %c0_7] : memref<1x8x128xbf16, #tpu.memory_space<vmem>>, vector<1x8x128xbf16>
    %5 = vector.shape_cast %4 : vector<1x8x128xbf16> to vector<8x128xbf16>
    %c0_8 = arith.constant 0 : index
    %c0_9 = arith.constant 0 : index
    %c0_10 = arith.constant 0 : index
    %6 = vector.load %arg5[%c0_8, %c0_9, %c0_10] : memref<1x8x8xi8, #tpu.memory_space<vmem>>, vector<1x8x8xi8>
    %7 = vector.shape_cast %6 : vector<1x8x8xi8> to vector<8x8xi8>
    %8 = arith.extsi %7 : vector<8x8xi8> to vector<8x8xi32>
    %c0_11 = arith.constant 0 : index
    %c0_12 = arith.constant 0 : index
    %c0_13 = arith.constant 0 : index
    %9 = vector.load %arg7[%c0_11, %c0_12, %c0_13] : memref<1x1x8xf32, #tpu.memory_space<vmem>>, vector<1x1x8xf32>
    %10 = vector.shape_cast %9 : vector<1x1x8xf32> to vector<1x8xf32>
    %c0_14 = arith.constant 0 : index
    %c0_15 = arith.constant 0 : index
    %11 = vector.load %arg13[%c0_14, %c0_15] : memref<8x32xf32, #tpu.memory_space<vmem>>, vector<8x32xf32>
    %12 = vector.extract_strided_slice %11 {offsets = [0, 0], sizes = [1, 32], strides = [1, 1]} : vector<8x32xf32> to vector<1x32xf32>
    %13 = vector.extract_strided_slice %11 {offsets = [1, 0], sizes = [1, 32], strides = [1, 1]} : vector<8x32xf32> to vector<1x32xf32>
    %14 = vector.extract_strided_slice %11 {offsets = [2, 0], sizes = [1, 32], strides = [1, 1]} : vector<8x32xf32> to vector<1x32xf32>
    %15 = vector.extract_strided_slice %11 {offsets = [3, 0], sizes = [1, 32], strides = [1, 1]} : vector<8x32xf32> to vector<1x32xf32>
    %16 = vector.extract_strided_slice %11 {offsets = [4, 0], sizes = [1, 32], strides = [1, 1]} : vector<8x32xf32> to vector<1x32xf32>
    %17 = vector.extract_strided_slice %11 {offsets = [5, 0], sizes = [1, 32], strides = [1, 1]} : vector<8x32xf32> to vector<1x32xf32>
    %18 = arith.truncf %1 : vector<8x32xf32> to vector<8x32xbf16>
    %c0_16 = arith.constant 0 : index
    %c0_17 = arith.constant 0 : index
    %19 = vector.load %arg8[%c0_16, %c0_17] : memref<32x72xbf16, #tpu.memory_space<vmem>>, vector<32x72xbf16>
    %cst = arith.constant dense<0.000000e+00> : vector<8x72xf32>
    %20 = tpu.matmul %18, %19, %cst {dimension_numbers = #tpu.dot_dimension_numbers<[1], [0], [0], [1], [0, 0, 1, 1], [], []>} : vector<8x32xbf16>, vector<32x72xbf16>, vector<8x72xf32> -> vector<8x72xf32>
    %c0_18 = arith.constant 0 : index
    %c0_19 = arith.constant 0 : index
    %21 = vector.load %arg9[%c0_18, %c0_19] : memref<1x72xf32, #tpu.memory_space<vmem>>, vector<1x72xf32>
    %22 = vector.broadcast %21 : vector<1x72xf32> to vector<8x72xf32>
    %23 = arith.addf %20, %22 : vector<8x72xf32>
    %24 = vector.extract_strided_slice %23 {offsets = [0, 0], sizes = [8, 32], strides = [1, 1]} : vector<8x72xf32> to vector<8x32xf32>
    %25 = vector.extract_strided_slice %23 {offsets = [0, 32], sizes = [8, 40], strides = [1, 1]} : vector<8x72xf32> to vector<8x40xf32>
    %26 = vector.shape_cast %10 : vector<1x8xf32> to vector<1x8xf32>
    %27 = vector.broadcast %26 : vector<1x8xf32> to vector<8x8xf32>
    %cst_20 = arith.constant 5.000000e-01 : f32
    %28 = vector.broadcast %cst_20 : f32 to vector<8x8xf32>
    %29 = arith.cmpf ogt, %27, %28 : vector<8x8xf32>
    %cst_21 = arith.constant -1.000000e+30 : f32
    %cst_22 = arith.constant 0.000000e+00 : f32
    %30 = vector.broadcast %cst_21 : f32 to vector<8x8xf32>
    %31 = vector.broadcast %cst_22 : f32 to vector<8x8xf32>
    %32 = arith.select %29, %30, %31 : vector<8x8xi1>, vector<8x8xf32>
    %c0_23 = arith.constant 0 : index
    %c0_24 = arith.constant 0 : index
    %c0_25 = arith.constant 0 : index
    %33 = vector.load %arg6[%c0_23, %c0_24, %c0_25] : memref<1x8x8xf32, #tpu.memory_space<vmem>>, vector<1x8x8xf32>
    %34 = vector.shape_cast %33 : vector<1x8x8xf32> to vector<8x8xf32>
    %cst_26 = arith.constant 0.353553385 : f32
    %35 = vector.broadcast %cst_26 : f32 to vector<8x8xf32>
    %36 = arith.mulf %34, %35 : vector<8x8xf32>
    %37 = arith.truncf %24 : vector<8x32xf32> to vector<8x32xbf16>
    %38 = vector.extract_strided_slice %37 {offsets = [0, 0], sizes = [8, 8], strides = [1, 1]} : vector<8x32xbf16> to vector<8x8xbf16>
    %39 = vector.extract_strided_slice %3 {offsets = [0, 0], sizes = [8, 8], strides = [1, 1]} : vector<8x32xbf16> to vector<8x8xbf16>
    %cst_27 = arith.constant dense<0.000000e+00> : vector<8x8xf32>
    %40 = tpu.matmul %38, %39, %cst_27 {dimension_numbers = #tpu.dot_dimension_numbers<[1], [1], [0], [0], [0, 0, 1, 0], [], []>} : vector<8x8xbf16>, vector<8x8xbf16>, vector<8x8xf32> -> vector<8x8xf32>
    %41 = vector.extract_strided_slice %37 {offsets = [0, 8], sizes = [8, 8], strides = [1, 1]} : vector<8x32xbf16> to vector<8x8xbf16>
    %42 = vector.extract_strided_slice %3 {offsets = [0, 8], sizes = [8, 8], strides = [1, 1]} : vector<8x32xbf16> to vector<8x8xbf16>
    %cst_28 = arith.constant dense<0.000000e+00> : vector<8x8xf32>
    %43 = tpu.matmul %41, %42, %cst_28 {dimension_numbers = #tpu.dot_dimension_numbers<[1], [1], [0], [0], [0, 0, 1, 0], [], []>} : vector<8x8xbf16>, vector<8x8xbf16>, vector<8x8xf32> -> vector<8x8xf32>
    %44 = vector.extract_strided_slice %37 {offsets = [0, 16], sizes = [8, 8], strides = [1, 1]} : vector<8x32xbf16> to vector<8x8xbf16>
    %45 = vector.extract_strided_slice %3 {offsets = [0, 16], sizes = [8, 8], strides = [1, 1]} : vector<8x32xbf16> to vector<8x8xbf16>
    %cst_29 = arith.constant dense<0.000000e+00> : vector<8x8xf32>
    %46 = tpu.matmul %44, %45, %cst_29 {dimension_numbers = #tpu.dot_dimension_numbers<[1], [1], [0], [0], [0, 0, 1, 0], [], []>} : vector<8x8xbf16>, vector<8x8xbf16>, vector<8x8xf32> -> vector<8x8xf32>
    %47 = vector.extract_strided_slice %37 {offsets = [0, 24], sizes = [8, 8], strides = [1, 1]} : vector<8x32xbf16> to vector<8x8xbf16>
    %48 = vector.extract_strided_slice %3 {offsets = [0, 24], sizes = [8, 8], strides = [1, 1]} : vector<8x32xbf16> to vector<8x8xbf16>
    %cst_30 = arith.constant dense<0.000000e+00> : vector<8x8xf32>
    %49 = tpu.matmul %47, %48, %cst_30 {dimension_numbers = #tpu.dot_dimension_numbers<[1], [1], [0], [0], [0, 0, 1, 0], [], []>} : vector<8x8xbf16>, vector<8x8xbf16>, vector<8x8xf32> -> vector<8x8xf32>
    %c0_i32 = arith.constant 0 : i32
    %50 = vector.broadcast %c0_i32 : i32 to vector<8x8xi32>
    %51 = arith.cmpi eq, %8, %50 : vector<8x8xi32>
    %52 = vector.extract_strided_slice %25 {offsets = [0, 0], sizes = [8, 1], strides = [1, 1]} : vector<8x40xf32> to vector<8x1xf32>
    %cst_31 = arith.constant 0.000000e+00 : f32
    %53 = vector.shape_cast %52 : vector<8x1xf32> to vector<8x1xf32>
    %54 = vector.broadcast %53 : vector<8x1xf32> to vector<8x8xf32>
    %55 = vector.broadcast %cst_31 : f32 to vector<8x8xf32>
    %56 = arith.select %51, %54, %55 : vector<8x8xi1>, vector<8x8xf32>
    %57 = arith.addf %40, %56 : vector<8x8xf32>
    %58 = vector.extract_strided_slice %25 {offsets = [0, 10], sizes = [8, 1], strides = [1, 1]} : vector<8x40xf32> to vector<8x1xf32>
    %cst_32 = arith.constant 0.000000e+00 : f32
    %59 = vector.shape_cast %58 : vector<8x1xf32> to vector<8x1xf32>
    %60 = vector.broadcast %59 : vector<8x1xf32> to vector<8x8xf32>
    %61 = vector.broadcast %cst_32 : f32 to vector<8x8xf32>
    %62 = arith.select %51, %60, %61 : vector<8x8xi1>, vector<8x8xf32>
    %63 = arith.addf %43, %62 : vector<8x8xf32>
    %64 = vector.extract_strided_slice %25 {offsets = [0, 20], sizes = [8, 1], strides = [1, 1]} : vector<8x40xf32> to vector<8x1xf32>
    %cst_33 = arith.constant 0.000000e+00 : f32
    %65 = vector.shape_cast %64 : vector<8x1xf32> to vector<8x1xf32>
    %66 = vector.broadcast %65 : vector<8x1xf32> to vector<8x8xf32>
    %67 = vector.broadcast %cst_33 : f32 to vector<8x8xf32>
    %68 = arith.select %51, %66, %67 : vector<8x8xi1>, vector<8x8xf32>
    %69 = arith.addf %46, %68 : vector<8x8xf32>
    %70 = vector.extract_strided_slice %25 {offsets = [0, 30], sizes = [8, 1], strides = [1, 1]} : vector<8x40xf32> to vector<8x1xf32>
    %cst_34 = arith.constant 0.000000e+00 : f32
    %71 = vector.shape_cast %70 : vector<8x1xf32> to vector<8x1xf32>
    %72 = vector.broadcast %71 : vector<8x1xf32> to vector<8x8xf32>
    %73 = vector.broadcast %cst_34 : f32 to vector<8x8xf32>
    %74 = arith.select %51, %72, %73 : vector<8x8xi1>, vector<8x8xf32>
    %75 = arith.addf %49, %74 : vector<8x8xf32>
    %c1_i32 = arith.constant 1 : i32
    %76 = vector.broadcast %c1_i32 : i32 to vector<8x8xi32>
    %77 = arith.cmpi eq, %8, %76 : vector<8x8xi32>
    %78 = vector.extract_strided_slice %25 {offsets = [0, 1], sizes = [8, 1], strides = [1, 1]} : vector<8x40xf32> to vector<8x1xf32>
    %cst_35 = arith.constant 0.000000e+00 : f32
    %79 = vector.shape_cast %78 : vector<8x1xf32> to vector<8x1xf32>
    %80 = vector.broadcast %79 : vector<8x1xf32> to vector<8x8xf32>
    %81 = vector.broadcast %cst_35 : f32 to vector<8x8xf32>
    %82 = arith.select %77, %80, %81 : vector<8x8xi1>, vector<8x8xf32>
    %83 = arith.addf %57, %82 : vector<8x8xf32>
    %84 = vector.extract_strided_slice %25 {offsets = [0, 11], sizes = [8, 1], strides = [1, 1]} : vector<8x40xf32> to vector<8x1xf32>
    %cst_36 = arith.constant 0.000000e+00 : f32
    %85 = vector.shape_cast %84 : vector<8x1xf32> to vector<8x1xf32>
    %86 = vector.broadcast %85 : vector<8x1xf32> to vector<8x8xf32>
    %87 = vector.broadcast %cst_36 : f32 to vector<8x8xf32>
    %88 = arith.select %77, %86, %87 : vector<8x8xi1>, vector<8x8xf32>
    %89 = arith.addf %63, %88 : vector<8x8xf32>
    %90 = vector.extract_strided_slice %25 {offsets = [0, 21], sizes = [8, 1], strides = [1, 1]} : vector<8x40xf32> to vector<8x1xf32>
    %cst_37 = arith.constant 0.000000e+00 : f32
    %91 = vector.shape_cast %90 : vector<8x1xf32> to vector<8x1xf32>
    %92 = vector.broadcast %91 : vector<8x1xf32> to vector<8x8xf32>
    %93 = vector.broadcast %cst_37 : f32 to vector<8x8xf32>
    %94 = arith.select %77, %92, %93 : vector<8x8xi1>, vector<8x8xf32>
    %95 = arith.addf %69, %94 : vector<8x8xf32>
    %96 = vector.extract_strided_slice %25 {offsets = [0, 31], sizes = [8, 1], strides = [1, 1]} : vector<8x40xf32> to vector<8x1xf32>
    %cst_38 = arith.constant 0.000000e+00 : f32
    %97 = vector.shape_cast %96 : vector<8x1xf32> to vector<8x1xf32>
    %98 = vector.broadcast %97 : vector<8x1xf32> to vector<8x8xf32>
    %99 = vector.broadcast %cst_38 : f32 to vector<8x8xf32>
    %100 = arith.select %77, %98, %99 : vector<8x8xi1>, vector<8x8xf32>
    %101 = arith.addf %75, %100 : vector<8x8xf32>
    %c2_i32 = arith.constant 2 : i32
    %102 = vector.broadcast %c2_i32 : i32 to vector<8x8xi32>
    %103 = arith.cmpi eq, %8, %102 : vector<8x8xi32>
    %104 = vector.extract_strided_slice %25 {offsets = [0, 2], sizes = [8, 1], strides = [1, 1]} : vector<8x40xf32> to vector<8x1xf32>
    %cst_39 = arith.constant 0.000000e+00 : f32
    %105 = vector.shape_cast %104 : vector<8x1xf32> to vector<8x1xf32>
    %106 = vector.broadcast %105 : vector<8x1xf32> to vector<8x8xf32>
    %107 = vector.broadcast %cst_39 : f32 to vector<8x8xf32>
    %108 = arith.select %103, %106, %107 : vector<8x8xi1>, vector<8x8xf32>
    %109 = arith.addf %83, %108 : vector<8x8xf32>
    %110 = vector.extract_strided_slice %25 {offsets = [0, 12], sizes = [8, 1], strides = [1, 1]} : vector<8x40xf32> to vector<8x1xf32>
    %cst_40 = arith.constant 0.000000e+00 : f32
    %111 = vector.shape_cast %110 : vector<8x1xf32> to vector<8x1xf32>
    %112 = vector.broadcast %111 : vector<8x1xf32> to vector<8x8xf32>
    %113 = vector.broadcast %cst_40 : f32 to vector<8x8xf32>
    %114 = arith.select %103, %112, %113 : vector<8x8xi1>, vector<8x8xf32>
    %115 = arith.addf %89, %114 : vector<8x8xf32>
    %116 = vector.extract_strided_slice %25 {offsets = [0, 22], sizes = [8, 1], strides = [1, 1]} : vector<8x40xf32> to vector<8x1xf32>
    %cst_41 = arith.constant 0.000000e+00 : f32
    %117 = vector.shape_cast %116 : vector<8x1xf32> to vector<8x1xf32>
    %118 = vector.broadcast %117 : vector<8x1xf32> to vector<8x8xf32>
    %119 = vector.broadcast %cst_41 : f32 to vector<8x8xf32>
    %120 = arith.select %103, %118, %119 : vector<8x8xi1>, vector<8x8xf32>
    %121 = arith.addf %95, %120 : vector<8x8xf32>
    %122 = vector.extract_strided_slice %25 {offsets = [0, 32], sizes = [8, 1], strides = [1, 1]} : vector<8x40xf32> to vector<8x1xf32>
    %cst_42 = arith.constant 0.000000e+00 : f32
    %123 = vector.shape_cast %122 : vector<8x1xf32> to vector<8x1xf32>
    %124 = vector.broadcast %123 : vector<8x1xf32> to vector<8x8xf32>
    %125 = vector.broadcast %cst_42 : f32 to vector<8x8xf32>
    %126 = arith.select %103, %124, %125 : vector<8x8xi1>, vector<8x8xf32>
    %127 = arith.addf %101, %126 : vector<8x8xf32>
    %c3_i32 = arith.constant 3 : i32
    %128 = vector.broadcast %c3_i32 : i32 to vector<8x8xi32>
    %129 = arith.cmpi eq, %8, %128 : vector<8x8xi32>
    %130 = vector.extract_strided_slice %25 {offsets = [0, 3], sizes = [8, 1], strides = [1, 1]} : vector<8x40xf32> to vector<8x1xf32>
    %cst_43 = arith.constant 0.000000e+00 : f32
    %131 = vector.shape_cast %130 : vector<8x1xf32> to vector<8x1xf32>
    %132 = vector.broadcast %131 : vector<8x1xf32> to vector<8x8xf32>
    %133 = vector.broadcast %cst_43 : f32 to vector<8x8xf32>
    %134 = arith.select %129, %132, %133 : vector<8x8xi1>, vector<8x8xf32>
    %135 = arith.addf %109, %134 : vector<8x8xf32>
    %136 = vector.extract_strided_slice %25 {offsets = [0, 13], sizes = [8, 1], strides = [1, 1]} : vector<8x40xf32> to vector<8x1xf32>
    %cst_44 = arith.constant 0.000000e+00 : f32
    %137 = vector.shape_cast %136 : vector<8x1xf32> to vector<8x1xf32>
    %138 = vector.broadcast %137 : vector<8x1xf32> to vector<8x8xf32>
    %139 = vector.broadcast %cst_44 : f32 to vector<8x8xf32>
    %140 = arith.select %129, %138, %139 : vector<8x8xi1>, vector<8x8xf32>
    %141 = arith.addf %115, %140 : vector<8x8xf32>
    %142 = vector.extract_strided_slice %25 {offsets = [0, 23], sizes = [8, 1], strides = [1, 1]} : vector<8x40xf32> to vector<8x1xf32>
    %cst_45 = arith.constant 0.000000e+00 : f32
    %143 = vector.shape_cast %142 : vector<8x1xf32> to vector<8x1xf32>
    %144 = vector.broadcast %143 : vector<8x1xf32> to vector<8x8xf32>
    %145 = vector.broadcast %cst_45 : f32 to vector<8x8xf32>
    %146 = arith.select %129, %144, %145 : vector<8x8xi1>, vector<8x8xf32>
    %147 = arith.addf %121, %146 : vector<8x8xf32>
    %148 = vector.extract_strided_slice %25 {offsets = [0, 33], sizes = [8, 1], strides = [1, 1]} : vector<8x40xf32> to vector<8x1xf32>
    %cst_46 = arith.constant 0.000000e+00 : f32
    %149 = vector.shape_cast %148 : vector<8x1xf32> to vector<8x1xf32>
    %150 = vector.broadcast %149 : vector<8x1xf32> to vector<8x8xf32>
    %151 = vector.broadcast %cst_46 : f32 to vector<8x8xf32>
    %152 = arith.select %129, %150, %151 : vector<8x8xi1>, vector<8x8xf32>
    %153 = arith.addf %127, %152 : vector<8x8xf32>
    %c4_i32 = arith.constant 4 : i32
    %154 = vector.broadcast %c4_i32 : i32 to vector<8x8xi32>
    %155 = arith.cmpi eq, %8, %154 : vector<8x8xi32>
    %156 = vector.extract_strided_slice %25 {offsets = [0, 4], sizes = [8, 1], strides = [1, 1]} : vector<8x40xf32> to vector<8x1xf32>
    %cst_47 = arith.constant 0.000000e+00 : f32
    %157 = vector.shape_cast %156 : vector<8x1xf32> to vector<8x1xf32>
    %158 = vector.broadcast %157 : vector<8x1xf32> to vector<8x8xf32>
    %159 = vector.broadcast %cst_47 : f32 to vector<8x8xf32>
    %160 = arith.select %155, %158, %159 : vector<8x8xi1>, vector<8x8xf32>
    %161 = arith.addf %135, %160 : vector<8x8xf32>
    %162 = vector.extract_strided_slice %25 {offsets = [0, 14], sizes = [8, 1], strides = [1, 1]} : vector<8x40xf32> to vector<8x1xf32>
    %cst_48 = arith.constant 0.000000e+00 : f32
    %163 = vector.shape_cast %162 : vector<8x1xf32> to vector<8x1xf32>
    %164 = vector.broadcast %163 : vector<8x1xf32> to vector<8x8xf32>
    %165 = vector.broadcast %cst_48 : f32 to vector<8x8xf32>
    %166 = arith.select %155, %164, %165 : vector<8x8xi1>, vector<8x8xf32>
    %167 = arith.addf %141, %166 : vector<8x8xf32>
    %168 = vector.extract_strided_slice %25 {offsets = [0, 24], sizes = [8, 1], strides = [1, 1]} : vector<8x40xf32> to vector<8x1xf32>
    %cst_49 = arith.constant 0.000000e+00 : f32
    %169 = vector.shape_cast %168 : vector<8x1xf32> to vector<8x1xf32>
    %170 = vector.broadcast %169 : vector<8x1xf32> to vector<8x8xf32>
    %171 = vector.broadcast %cst_49 : f32 to vector<8x8xf32>
    %172 = arith.select %155, %170, %171 : vector<8x8xi1>, vector<8x8xf32>
    %173 = arith.addf %147, %172 : vector<8x8xf32>
    %174 = vector.extract_strided_slice %25 {offsets = [0, 34], sizes = [8, 1], strides = [1, 1]} : vector<8x40xf32> to vector<8x1xf32>
    %cst_50 = arith.constant 0.000000e+00 : f32
    %175 = vector.shape_cast %174 : vector<8x1xf32> to vector<8x1xf32>
    %176 = vector.broadcast %175 : vector<8x1xf32> to vector<8x8xf32>
    %177 = vector.broadcast %cst_50 : f32 to vector<8x8xf32>
    %178 = arith.select %155, %176, %177 : vector<8x8xi1>, vector<8x8xf32>
    %179 = arith.addf %153, %178 : vector<8x8xf32>
    %c5_i32 = arith.constant 5 : i32
    %180 = vector.broadcast %c5_i32 : i32 to vector<8x8xi32>
    %181 = arith.cmpi eq, %8, %180 : vector<8x8xi32>
    %182 = vector.extract_strided_slice %25 {offsets = [0, 5], sizes = [8, 1], strides = [1, 1]} : vector<8x40xf32> to vector<8x1xf32>
    %cst_51 = arith.constant 0.000000e+00 : f32
    %183 = vector.shape_cast %182 : vector<8x1xf32> to vector<8x1xf32>
    %184 = vector.broadcast %183 : vector<8x1xf32> to vector<8x8xf32>
    %185 = vector.broadcast %cst_51 : f32 to vector<8x8xf32>
    %186 = arith.select %181, %184, %185 : vector<8x8xi1>, vector<8x8xf32>
    %187 = arith.addf %161, %186 : vector<8x8xf32>
    %188 = vector.extract_strided_slice %25 {offsets = [0, 15], sizes = [8, 1], strides = [1, 1]} : vector<8x40xf32> to vector<8x1xf32>
    %cst_52 = arith.constant 0.000000e+00 : f32
    %189 = vector.shape_cast %188 : vector<8x1xf32> to vector<8x1xf32>
    %190 = vector.broadcast %189 : vector<8x1xf32> to vector<8x8xf32>
    %191 = vector.broadcast %cst_52 : f32 to vector<8x8xf32>
    %192 = arith.select %181, %190, %191 : vector<8x8xi1>, vector<8x8xf32>
    %193 = arith.addf %167, %192 : vector<8x8xf32>
    %194 = vector.extract_strided_slice %25 {offsets = [0, 25], sizes = [8, 1], strides = [1, 1]} : vector<8x40xf32> to vector<8x1xf32>
    %cst_53 = arith.constant 0.000000e+00 : f32
    %195 = vector.shape_cast %194 : vector<8x1xf32> to vector<8x1xf32>
    %196 = vector.broadcast %195 : vector<8x1xf32> to vector<8x8xf32>
    %197 = vector.broadcast %cst_53 : f32 to vector<8x8xf32>
    %198 = arith.select %181, %196, %197 : vector<8x8xi1>, vector<8x8xf32>
    %199 = arith.addf %173, %198 : vector<8x8xf32>
    %200 = vector.extract_strided_slice %25 {offsets = [0, 35], sizes = [8, 1], strides = [1, 1]} : vector<8x40xf32> to vector<8x1xf32>
    %cst_54 = arith.constant 0.000000e+00 : f32
    %201 = vector.shape_cast %200 : vector<8x1xf32> to vector<8x1xf32>
    %202 = vector.broadcast %201 : vector<8x1xf32> to vector<8x8xf32>
    %203 = vector.broadcast %cst_54 : f32 to vector<8x8xf32>
    %204 = arith.select %181, %202, %203 : vector<8x8xi1>, vector<8x8xf32>
    %205 = arith.addf %179, %204 : vector<8x8xf32>
    %c6_i32 = arith.constant 6 : i32
    %206 = vector.broadcast %c6_i32 : i32 to vector<8x8xi32>
    %207 = arith.cmpi eq, %8, %206 : vector<8x8xi32>
    %208 = vector.extract_strided_slice %25 {offsets = [0, 6], sizes = [8, 1], strides = [1, 1]} : vector<8x40xf32> to vector<8x1xf32>
    %cst_55 = arith.constant 0.000000e+00 : f32
    %209 = vector.shape_cast %208 : vector<8x1xf32> to vector<8x1xf32>
    %210 = vector.broadcast %209 : vector<8x1xf32> to vector<8x8xf32>
    %211 = vector.broadcast %cst_55 : f32 to vector<8x8xf32>
    %212 = arith.select %207, %210, %211 : vector<8x8xi1>, vector<8x8xf32>
    %213 = arith.addf %187, %212 : vector<8x8xf32>
    %214 = vector.extract_strided_slice %25 {offsets = [0, 16], sizes = [8, 1], strides = [1, 1]} : vector<8x40xf32> to vector<8x1xf32>
    %cst_56 = arith.constant 0.000000e+00 : f32
    %215 = vector.shape_cast %214 : vector<8x1xf32> to vector<8x1xf32>
    %216 = vector.broadcast %215 : vector<8x1xf32> to vector<8x8xf32>
    %217 = vector.broadcast %cst_56 : f32 to vector<8x8xf32>
    %218 = arith.select %207, %216, %217 : vector<8x8xi1>, vector<8x8xf32>
    %219 = arith.addf %193, %218 : vector<8x8xf32>
    %220 = vector.extract_strided_slice %25 {offsets = [0, 26], sizes = [8, 1], strides = [1, 1]} : vector<8x40xf32> to vector<8x1xf32>
    %cst_57 = arith.constant 0.000000e+00 : f32
    %221 = vector.shape_cast %220 : vector<8x1xf32> to vector<8x1xf32>
    %222 = vector.broadcast %221 : vector<8x1xf32> to vector<8x8xf32>
    %223 = vector.broadcast %cst_57 : f32 to vector<8x8xf32>
    %224 = arith.select %207, %222, %223 : vector<8x8xi1>, vector<8x8xf32>
    %225 = arith.addf %199, %224 : vector<8x8xf32>
    %226 = vector.extract_strided_slice %25 {offsets = [0, 36], sizes = [8, 1], strides = [1, 1]} : vector<8x40xf32> to vector<8x1xf32>
    %cst_58 = arith.constant 0.000000e+00 : f32
    %227 = vector.shape_cast %226 : vector<8x1xf32> to vector<8x1xf32>
    %228 = vector.broadcast %227 : vector<8x1xf32> to vector<8x8xf32>
    %229 = vector.broadcast %cst_58 : f32 to vector<8x8xf32>
    %230 = arith.select %207, %228, %229 : vector<8x8xi1>, vector<8x8xf32>
    %231 = arith.addf %205, %230 : vector<8x8xf32>
    %c7_i32 = arith.constant 7 : i32
    %232 = vector.broadcast %c7_i32 : i32 to vector<8x8xi32>
    %233 = arith.cmpi eq, %8, %232 : vector<8x8xi32>
    %234 = vector.extract_strided_slice %25 {offsets = [0, 7], sizes = [8, 1], strides = [1, 1]} : vector<8x40xf32> to vector<8x1xf32>
    %cst_59 = arith.constant 0.000000e+00 : f32
    %235 = vector.shape_cast %234 : vector<8x1xf32> to vector<8x1xf32>
    %236 = vector.broadcast %235 : vector<8x1xf32> to vector<8x8xf32>
    %237 = vector.broadcast %cst_59 : f32 to vector<8x8xf32>
    %238 = arith.select %233, %236, %237 : vector<8x8xi1>, vector<8x8xf32>
    %239 = arith.addf %213, %238 : vector<8x8xf32>
    %240 = vector.extract_strided_slice %25 {offsets = [0, 17], sizes = [8, 1], strides = [1, 1]} : vector<8x40xf32> to vector<8x1xf32>
    %cst_60 = arith.constant 0.000000e+00 : f32
    %241 = vector.shape_cast %240 : vector<8x1xf32> to vector<8x1xf32>
    %242 = vector.broadcast %241 : vector<8x1xf32> to vector<8x8xf32>
    %243 = vector.broadcast %cst_60 : f32 to vector<8x8xf32>
    %244 = arith.select %233, %242, %243 : vector<8x8xi1>, vector<8x8xf32>
    %245 = arith.addf %219, %244 : vector<8x8xf32>
    %246 = vector.extract_strided_slice %25 {offsets = [0, 27], sizes = [8, 1], strides = [1, 1]} : vector<8x40xf32> to vector<8x1xf32>
    %cst_61 = arith.constant 0.000000e+00 : f32
    %247 = vector.shape_cast %246 : vector<8x1xf32> to vector<8x1xf32>
    %248 = vector.broadcast %247 : vector<8x1xf32> to vector<8x8xf32>
    %249 = vector.broadcast %cst_61 : f32 to vector<8x8xf32>
    %250 = arith.select %233, %248, %249 : vector<8x8xi1>, vector<8x8xf32>
    %251 = arith.addf %225, %250 : vector<8x8xf32>
    %252 = vector.extract_strided_slice %25 {offsets = [0, 37], sizes = [8, 1], strides = [1, 1]} : vector<8x40xf32> to vector<8x1xf32>
    %cst_62 = arith.constant 0.000000e+00 : f32
    %253 = vector.shape_cast %252 : vector<8x1xf32> to vector<8x1xf32>
    %254 = vector.broadcast %253 : vector<8x1xf32> to vector<8x8xf32>
    %255 = vector.broadcast %cst_62 : f32 to vector<8x8xf32>
    %256 = arith.select %233, %254, %255 : vector<8x8xi1>, vector<8x8xf32>
    %257 = arith.addf %231, %256 : vector<8x8xf32>
    %c8_i32 = arith.constant 8 : i32
    %258 = vector.broadcast %c8_i32 : i32 to vector<8x8xi32>
    %259 = arith.cmpi eq, %8, %258 : vector<8x8xi32>
    %260 = vector.extract_strided_slice %25 {offsets = [0, 8], sizes = [8, 1], strides = [1, 1]} : vector<8x40xf32> to vector<8x1xf32>
    %cst_63 = arith.constant 0.000000e+00 : f32
    %261 = vector.shape_cast %260 : vector<8x1xf32> to vector<8x1xf32>
    %262 = vector.broadcast %261 : vector<8x1xf32> to vector<8x8xf32>
    %263 = vector.broadcast %cst_63 : f32 to vector<8x8xf32>
    %264 = arith.select %259, %262, %263 : vector<8x8xi1>, vector<8x8xf32>
    %265 = arith.addf %239, %264 : vector<8x8xf32>
    %266 = vector.extract_strided_slice %25 {offsets = [0, 18], sizes = [8, 1], strides = [1, 1]} : vector<8x40xf32> to vector<8x1xf32>
    %cst_64 = arith.constant 0.000000e+00 : f32
    %267 = vector.shape_cast %266 : vector<8x1xf32> to vector<8x1xf32>
    %268 = vector.broadcast %267 : vector<8x1xf32> to vector<8x8xf32>
    %269 = vector.broadcast %cst_64 : f32 to vector<8x8xf32>
    %270 = arith.select %259, %268, %269 : vector<8x8xi1>, vector<8x8xf32>
    %271 = arith.addf %245, %270 : vector<8x8xf32>
    %272 = vector.extract_strided_slice %25 {offsets = [0, 28], sizes = [8, 1], strides = [1, 1]} : vector<8x40xf32> to vector<8x1xf32>
    %cst_65 = arith.constant 0.000000e+00 : f32
    %273 = vector.shape_cast %272 : vector<8x1xf32> to vector<8x1xf32>
    %274 = vector.broadcast %273 : vector<8x1xf32> to vector<8x8xf32>
    %275 = vector.broadcast %cst_65 : f32 to vector<8x8xf32>
    %276 = arith.select %259, %274, %275 : vector<8x8xi1>, vector<8x8xf32>
    %277 = arith.addf %251, %276 : vector<8x8xf32>
    %278 = vector.extract_strided_slice %25 {offsets = [0, 38], sizes = [8, 1], strides = [1, 1]} : vector<8x40xf32> to vector<8x1xf32>
    %cst_66 = arith.constant 0.000000e+00 : f32
    %279 = vector.shape_cast %278 : vector<8x1xf32> to vector<8x1xf32>
    %280 = vector.broadcast %279 : vector<8x1xf32> to vector<8x8xf32>
    %281 = vector.broadcast %cst_66 : f32 to vector<8x8xf32>
    %282 = arith.select %259, %280, %281 : vector<8x8xi1>, vector<8x8xf32>
    %283 = arith.addf %257, %282 : vector<8x8xf32>
    %c9_i32 = arith.constant 9 : i32
    %284 = vector.broadcast %c9_i32 : i32 to vector<8x8xi32>
    %285 = arith.cmpi eq, %8, %284 : vector<8x8xi32>
    %286 = vector.extract_strided_slice %25 {offsets = [0, 9], sizes = [8, 1], strides = [1, 1]} : vector<8x40xf32> to vector<8x1xf32>
    %cst_67 = arith.constant 0.000000e+00 : f32
    %287 = vector.shape_cast %286 : vector<8x1xf32> to vector<8x1xf32>
    %288 = vector.broadcast %287 : vector<8x1xf32> to vector<8x8xf32>
    %289 = vector.broadcast %cst_67 : f32 to vector<8x8xf32>
    %290 = arith.select %285, %288, %289 : vector<8x8xi1>, vector<8x8xf32>
    %291 = arith.addf %265, %290 : vector<8x8xf32>
    %292 = vector.extract_strided_slice %25 {offsets = [0, 19], sizes = [8, 1], strides = [1, 1]} : vector<8x40xf32> to vector<8x1xf32>
    %cst_68 = arith.constant 0.000000e+00 : f32
    %293 = vector.shape_cast %292 : vector<8x1xf32> to vector<8x1xf32>
    %294 = vector.broadcast %293 : vector<8x1xf32> to vector<8x8xf32>
    %295 = vector.broadcast %cst_68 : f32 to vector<8x8xf32>
    %296 = arith.select %285, %294, %295 : vector<8x8xi1>, vector<8x8xf32>
    %297 = arith.addf %271, %296 : vector<8x8xf32>
    %298 = vector.extract_strided_slice %25 {offsets = [0, 29], sizes = [8, 1], strides = [1, 1]} : vector<8x40xf32> to vector<8x1xf32>
    %cst_69 = arith.constant 0.000000e+00 : f32
    %299 = vector.shape_cast %298 : vector<8x1xf32> to vector<8x1xf32>
    %300 = vector.broadcast %299 : vector<8x1xf32> to vector<8x8xf32>
    %301 = vector.broadcast %cst_69 : f32 to vector<8x8xf32>
    %302 = arith.select %285, %300, %301 : vector<8x8xi1>, vector<8x8xf32>
    %303 = arith.addf %277, %302 : vector<8x8xf32>
    %304 = vector.extract_strided_slice %25 {offsets = [0, 39], sizes = [8, 1], strides = [1, 1]} : vector<8x40xf32> to vector<8x1xf32>
    %cst_70 = arith.constant 0.000000e+00 : f32
    %305 = vector.shape_cast %304 : vector<8x1xf32> to vector<8x1xf32>
    %306 = vector.broadcast %305 : vector<8x1xf32> to vector<8x8xf32>
    %307 = vector.broadcast %cst_70 : f32 to vector<8x8xf32>
    %308 = arith.select %285, %306, %307 : vector<8x8xi1>, vector<8x8xf32>
    %309 = arith.addf %283, %308 : vector<8x8xf32>
    %cst_71 = arith.constant 0.000000e+00 : f32
    %310 = vector.broadcast %cst_71 : f32 to vector<8x32xf32>
    %311 = arith.mulf %36, %291 : vector<8x8xf32>
    %312 = arith.addf %311, %32 : vector<8x8xf32>
    %cst_72 = arith.constant dense<0xFF800000> : vector<8xf32>
    %313 = vector.multi_reduction <maximumf>, %312, %cst_72 [1] : vector<8x8xf32> to vector<8xf32>
    %314 = vector.shape_cast %313 : vector<8xf32> to vector<8x1xf32>
    %315 = vector.broadcast %314 : vector<8x1xf32> to vector<8x8xf32>
    %316 = arith.subf %312, %315 : vector<8x8xf32>
    %317 = math.exp %316 : vector<8x8xf32>
    %cst_73 = arith.constant dense<0.000000e+00> : vector<8xf32>
    %318 = vector.multi_reduction <add>, %317, %cst_73 [1] : vector<8x8xf32> to vector<8xf32>
    %319 = vector.shape_cast %318 : vector<8xf32> to vector<8x1xf32>
    %320 = tpu.reciprocal %319 {approx = true} : vector<8x1xf32> -> vector<8x1xf32>
    %321 = vector.broadcast %320 : vector<8x1xf32> to vector<8x8xf32>
    %322 = arith.mulf %317, %321 : vector<8x8xf32>
    %323 = arith.truncf %322 : vector<8x8xf32> to vector<8x8xbf16>
    %c0_74 = arith.constant 0 : index
    %c0_75 = arith.constant 0 : index
    %c0_76 = arith.constant 0 : index
    %c0_77 = arith.constant 0 : index
    %324 = vector.load %arg15[%c0_74, %c0_75, %c0_76, %c0_77] : memref<1x4x8x8xbf16, #tpu.memory_space<vmem>>, vector<1x1x8x8xbf16>
    %325 = vector.shape_cast %324 : vector<1x1x8x8xbf16> to vector<8x8xbf16>
    %326 = vector.shape_cast %323 : vector<8x8xbf16> to vector<1x1x8x8xbf16>
    tpu.vector_store %arg15[%c0_74, %c0_75, %c0_76, %c0_77], %326 {strides = array<i32>} : memref<1x4x8x8xbf16, #tpu.memory_space<vmem>>, vector<1x1x8x8xbf16>,
    %327 = vector.extract_strided_slice %5 {offsets = [0, 0], sizes = [8, 32], strides = [1, 1]} : vector<8x128xbf16> to vector<8x32xbf16>
    %cst_78 = arith.constant dense<0.000000e+00> : vector<8x32xf32>
    %328 = tpu.matmul %323, %327, %cst_78 {dimension_numbers = #tpu.dot_dimension_numbers<[1], [0], [0], [1], [0, 0, 1, 1], [], []>} : vector<8x8xbf16>, vector<8x32xbf16>, vector<8x32xf32> -> vector<8x32xf32>
    %329 = arith.addf %310, %328 : vector<8x32xf32>
    %330 = arith.mulf %36, %297 : vector<8x8xf32>
    %331 = arith.addf %330, %32 : vector<8x8xf32>
    %cst_79 = arith.constant dense<0xFF800000> : vector<8xf32>
    %332 = vector.multi_reduction <maximumf>, %331, %cst_79 [1] : vector<8x8xf32> to vector<8xf32>
    %333 = vector.shape_cast %332 : vector<8xf32> to vector<8x1xf32>
    %334 = vector.broadcast %333 : vector<8x1xf32> to vector<8x8xf32>
    %335 = arith.subf %331, %334 : vector<8x8xf32>
    %336 = math.exp %335 : vector<8x8xf32>
    %cst_80 = arith.constant dense<0.000000e+00> : vector<8xf32>
    %337 = vector.multi_reduction <add>, %336, %cst_80 [1] : vector<8x8xf32> to vector<8xf32>
    %338 = vector.shape_cast %337 : vector<8xf32> to vector<8x1xf32>
    %339 = tpu.reciprocal %338 {approx = true} : vector<8x1xf32> -> vector<8x1xf32>
    %340 = vector.broadcast %339 : vector<8x1xf32> to vector<8x8xf32>
    %341 = arith.mulf %336, %340 : vector<8x8xf32>
    %342 = arith.truncf %341 : vector<8x8xf32> to vector<8x8xbf16>
    %c0_81 = arith.constant 0 : index
    %c1 = arith.constant 1 : index
    %c0_82 = arith.constant 0 : index
    %c0_83 = arith.constant 0 : index
    %343 = vector.load %arg15[%c0_81, %c1, %c0_82, %c0_83] : memref<1x4x8x8xbf16, #tpu.memory_space<vmem>>, vector<1x1x8x8xbf16>
    %344 = vector.shape_cast %343 : vector<1x1x8x8xbf16> to vector<8x8xbf16>
    %345 = vector.shape_cast %342 : vector<8x8xbf16> to vector<1x1x8x8xbf16>
    tpu.vector_store %arg15[%c0_81, %c1, %c0_82, %c0_83], %345 {strides = array<i32>} : memref<1x4x8x8xbf16, #tpu.memory_space<vmem>>, vector<1x1x8x8xbf16>,
    %346 = vector.extract_strided_slice %5 {offsets = [0, 32], sizes = [8, 32], strides = [1, 1]} : vector<8x128xbf16> to vector<8x32xbf16>
    %cst_84 = arith.constant dense<0.000000e+00> : vector<8x32xf32>
    %347 = tpu.matmul %342, %346, %cst_84 {dimension_numbers = #tpu.dot_dimension_numbers<[1], [0], [0], [1], [0, 0, 1, 1], [], []>} : vector<8x8xbf16>, vector<8x32xbf16>, vector<8x32xf32> -> vector<8x32xf32>
    %348 = arith.addf %329, %347 : vector<8x32xf32>
    %349 = arith.mulf %36, %303 : vector<8x8xf32>
    %350 = arith.addf %349, %32 : vector<8x8xf32>
    %cst_85 = arith.constant dense<0xFF800000> : vector<8xf32>
    %351 = vector.multi_reduction <maximumf>, %350, %cst_85 [1] : vector<8x8xf32> to vector<8xf32>
    %352 = vector.shape_cast %351 : vector<8xf32> to vector<8x1xf32>
    %353 = vector.broadcast %352 : vector<8x1xf32> to vector<8x8xf32>
    %354 = arith.subf %350, %353 : vector<8x8xf32>
    %355 = math.exp %354 : vector<8x8xf32>
    %cst_86 = arith.constant dense<0.000000e+00> : vector<8xf32>
    %356 = vector.multi_reduction <add>, %355, %cst_86 [1] : vector<8x8xf32> to vector<8xf32>
    %357 = vector.shape_cast %356 : vector<8xf32> to vector<8x1xf32>
    %358 = tpu.reciprocal %357 {approx = true} : vector<8x1xf32> -> vector<8x1xf32>
    %359 = vector.broadcast %358 : vector<8x1xf32> to vector<8x8xf32>
    %360 = arith.mulf %355, %359 : vector<8x8xf32>
    %361 = arith.truncf %360 : vector<8x8xf32> to vector<8x8xbf16>
    %c0_87 = arith.constant 0 : index
    %c2 = arith.constant 2 : index
    %c0_88 = arith.constant 0 : index
    %c0_89 = arith.constant 0 : index
    %362 = vector.load %arg15[%c0_87, %c2, %c0_88, %c0_89] : memref<1x4x8x8xbf16, #tpu.memory_space<vmem>>, vector<1x1x8x8xbf16>
    %363 = vector.shape_cast %362 : vector<1x1x8x8xbf16> to vector<8x8xbf16>
    %364 = vector.shape_cast %361 : vector<8x8xbf16> to vector<1x1x8x8xbf16>
    tpu.vector_store %arg15[%c0_87, %c2, %c0_88, %c0_89], %364 {strides = array<i32>} : memref<1x4x8x8xbf16, #tpu.memory_space<vmem>>, vector<1x1x8x8xbf16>,
    %365 = vector.extract_strided_slice %5 {offsets = [0, 64], sizes = [8, 32], strides = [1, 1]} : vector<8x128xbf16> to vector<8x32xbf16>
    %cst_90 = arith.constant dense<0.000000e+00> : vector<8x32xf32>
    %366 = tpu.matmul %361, %365, %cst_90 {dimension_numbers = #tpu.dot_dimension_numbers<[1], [0], [0], [1], [0, 0, 1, 1], [], []>} : vector<8x8xbf16>, vector<8x32xbf16>, vector<8x32xf32> -> vector<8x32xf32>
    %367 = arith.addf %348, %366 : vector<8x32xf32>
    %368 = arith.mulf %36, %309 : vector<8x8xf32>
    %369 = arith.addf %368, %32 : vector<8x8xf32>
    %cst_91 = arith.constant dense<0xFF800000> : vector<8xf32>
    %370 = vector.multi_reduction <maximumf>, %369, %cst_91 [1] : vector<8x8xf32> to vector<8xf32>
    %371 = vector.shape_cast %370 : vector<8xf32> to vector<8x1xf32>
    %372 = vector.broadcast %371 : vector<8x1xf32> to vector<8x8xf32>
    %373 = arith.subf %369, %372 : vector<8x8xf32>
    %374 = math.exp %373 : vector<8x8xf32>
    %cst_92 = arith.constant dense<0.000000e+00> : vector<8xf32>
    %375 = vector.multi_reduction <add>, %374, %cst_92 [1] : vector<8x8xf32> to vector<8xf32>
    %376 = vector.shape_cast %375 : vector<8xf32> to vector<8x1xf32>
    %377 = tpu.reciprocal %376 {approx = true} : vector<8x1xf32> -> vector<8x1xf32>
    %378 = vector.broadcast %377 : vector<8x1xf32> to vector<8x8xf32>
    %379 = arith.mulf %374, %378 : vector<8x8xf32>
    %380 = arith.truncf %379 : vector<8x8xf32> to vector<8x8xbf16>
    %c0_93 = arith.constant 0 : index
    %c3 = arith.constant 3 : index
    %c0_94 = arith.constant 0 : index
    %c0_95 = arith.constant 0 : index
    %381 = vector.load %arg15[%c0_93, %c3, %c0_94, %c0_95] : memref<1x4x8x8xbf16, #tpu.memory_space<vmem>>, vector<1x1x8x8xbf16>
    %382 = vector.shape_cast %381 : vector<1x1x8x8xbf16> to vector<8x8xbf16>
    %383 = vector.shape_cast %380 : vector<8x8xbf16> to vector<1x1x8x8xbf16>
    tpu.vector_store %arg15[%c0_93, %c3, %c0_94, %c0_95], %383 {strides = array<i32>} : memref<1x4x8x8xbf16, #tpu.memory_space<vmem>>, vector<1x1x8x8xbf16>,
    %384 = vector.extract_strided_slice %5 {offsets = [0, 96], sizes = [8, 32], strides = [1, 1]} : vector<8x128xbf16> to vector<8x32xbf16>
    %cst_96 = arith.constant dense<0.000000e+00> : vector<8x32xf32>
    %385 = tpu.matmul %380, %384, %cst_96 {dimension_numbers = #tpu.dot_dimension_numbers<[1], [0], [0], [1], [0, 0, 1, 1], [], []>} : vector<8x8xbf16>, vector<8x32xbf16>, vector<8x32xf32> -> vector<8x32xf32>
    %386 = arith.addf %367, %385 : vector<8x32xf32>
    %387 = vector.broadcast %12 : vector<1x32xf32> to vector<8x32xf32>
    %388 = arith.addf %386, %387 : vector<8x32xf32>
    %389 = arith.addf %388, %1 : vector<8x32xf32>
    %cst_97 = arith.constant dense<0.000000e+00> : vector<8xf32>
    %390 = vector.multi_reduction <add>, %389, %cst_97 [1] : vector<8x32xf32> to vector<8xf32>
    %391 = vector.shape_cast %390 : vector<8xf32> to vector<8x1xf32>
    %cst_98 = arith.constant 3.200000e+01 : f32
    %392 = vector.broadcast %cst_98 : f32 to vector<8x1xf32>
    %393 = arith.divf %391, %392 : vector<8x1xf32>
    %394 = vector.broadcast %393 : vector<8x1xf32> to vector<8x32xf32>
    %395 = arith.subf %389, %394 : vector<8x32xf32>
    %396 = arith.mulf %395, %395 : vector<8x32xf32>
    %cst_99 = arith.constant dense<0.000000e+00> : vector<8xf32>
    %397 = vector.multi_reduction <add>, %396, %cst_99 [1] : vector<8x32xf32> to vector<8xf32>
    %398 = vector.shape_cast %397 : vector<8xf32> to vector<8x1xf32>
    %cst_100 = arith.constant 3.200000e+01 : f32
    %399 = vector.broadcast %cst_100 : f32 to vector<8x1xf32>
    %400 = arith.divf %398, %399 : vector<8x1xf32>
    %401 = vector.broadcast %393 : vector<8x1xf32> to vector<8x32xf32>
    %402 = arith.subf %389, %401 : vector<8x32xf32>
    %cst_101 = arith.constant 9.99999974E-6 : f32
    %403 = vector.broadcast %cst_101 : f32 to vector<8x1xf32>
    %404 = arith.addf %400, %403 : vector<8x1xf32>
    %405 = math.rsqrt %404 : vector<8x1xf32>
    %406 = vector.broadcast %405 : vector<8x1xf32> to vector<8x32xf32>
    %407 = arith.mulf %402, %406 : vector<8x32xf32>
    %408 = vector.broadcast %13 : vector<1x32xf32> to vector<8x32xf32>
    %409 = arith.mulf %407, %408 : vector<8x32xf32>
    %410 = vector.broadcast %14 : vector<1x32xf32> to vector<8x32xf32>
    %411 = arith.addf %409, %410 : vector<8x32xf32>
    %412 = arith.truncf %411 : vector<8x32xf32> to vector<8x32xbf16>
    %c0_102 = arith.constant 0 : index
    %c0_103 = arith.constant 0 : index
    %413 = vector.load %arg10[%c0_102, %c0_103] : memref<32x64xbf16, #tpu.memory_space<vmem>>, vector<32x64xbf16>
    %cst_104 = arith.constant dense<0.000000e+00> : vector<8x64xf32>
    %414 = tpu.matmul %412, %413, %cst_104 {dimension_numbers = #tpu.dot_dimension_numbers<[1], [0], [0], [1], [0, 0, 1, 1], [], []>} : vector<8x32xbf16>, vector<32x64xbf16>, vector<8x64xf32> -> vector<8x64xf32>
    %c0_105 = arith.constant 0 : index
    %c0_106 = arith.constant 0 : index
    %415 = vector.load %arg11[%c0_105, %c0_106] : memref<1x64xf32, #tpu.memory_space<vmem>>, vector<1x64xf32>
    %416 = vector.broadcast %415 : vector<1x64xf32> to vector<8x64xf32>
    %417 = arith.addf %414, %416 : vector<8x64xf32>
    %cst_107 = arith.constant 0.000000e+00 : f32
    %418 = vector.broadcast %cst_107 : f32 to vector<8x64xf32>
    %419 = arith.maximumf %417, %418 : vector<8x64xf32>
    %420 = arith.truncf %419 : vector<8x64xf32> to vector<8x64xbf16>
    %c0_108 = arith.constant 0 : index
    %c0_109 = arith.constant 0 : index
    %421 = vector.load %arg12[%c0_108, %c0_109] : memref<64x32xbf16, #tpu.memory_space<vmem>>, vector<64x32xbf16>
    %cst_110 = arith.constant dense<0.000000e+00> : vector<8x32xf32>
    %422 = tpu.matmul %420, %421, %cst_110 {dimension_numbers = #tpu.dot_dimension_numbers<[1], [0], [0], [1], [0, 0, 1, 1], [], []>} : vector<8x64xbf16>, vector<64x32xbf16>, vector<8x32xf32> -> vector<8x32xf32>
    %423 = vector.broadcast %15 : vector<1x32xf32> to vector<8x32xf32>
    %424 = arith.addf %422, %423 : vector<8x32xf32>
    %425 = arith.addf %411, %424 : vector<8x32xf32>
    %cst_111 = arith.constant dense<0.000000e+00> : vector<8xf32>
    %426 = vector.multi_reduction <add>, %425, %cst_111 [1] : vector<8x32xf32> to vector<8xf32>
    %427 = vector.shape_cast %426 : vector<8xf32> to vector<8x1xf32>
    %cst_112 = arith.constant 3.200000e+01 : f32
    %428 = vector.broadcast %cst_112 : f32 to vector<8x1xf32>
    %429 = arith.divf %427, %428 : vector<8x1xf32>
    %430 = vector.broadcast %429 : vector<8x1xf32> to vector<8x32xf32>
    %431 = arith.subf %425, %430 : vector<8x32xf32>
    %432 = arith.mulf %431, %431 : vector<8x32xf32>
    %cst_113 = arith.constant dense<0.000000e+00> : vector<8xf32>
    %433 = vector.multi_reduction <add>, %432, %cst_113 [1] : vector<8x32xf32> to vector<8xf32>
    %434 = vector.shape_cast %433 : vector<8xf32> to vector<8x1xf32>
    %cst_114 = arith.constant 3.200000e+01 : f32
    %435 = vector.broadcast %cst_114 : f32 to vector<8x1xf32>
    %436 = arith.divf %434, %435 : vector<8x1xf32>
    %437 = vector.broadcast %429 : vector<8x1xf32> to vector<8x32xf32>
    %438 = arith.subf %425, %437 : vector<8x32xf32>
    %cst_115 = arith.constant 9.99999974E-6 : f32
    %439 = vector.broadcast %cst_115 : f32 to vector<8x1xf32>
    %440 = arith.addf %436, %439 : vector<8x1xf32>
    %441 = math.rsqrt %440 : vector<8x1xf32>
    %442 = vector.broadcast %441 : vector<8x1xf32> to vector<8x32xf32>
    %443 = arith.mulf %438, %442 : vector<8x32xf32>
    %444 = vector.broadcast %16 : vector<1x32xf32> to vector<8x32xf32>
    %445 = arith.mulf %443, %444 : vector<8x32xf32>
    %446 = vector.broadcast %17 : vector<1x32xf32> to vector<8x32xf32>
    %447 = arith.addf %445, %446 : vector<8x32xf32>
    %c0_116 = arith.constant 0 : index
    %c0_117 = arith.constant 0 : index
    %c0_118 = arith.constant 0 : index
    %448 = vector.load %arg14[%c0_116, %c0_117, %c0_118] : memref<1x8x32xf32, #tpu.memory_space<vmem>>, vector<1x8x32xf32>
    %449 = vector.shape_cast %448 : vector<1x8x32xf32> to vector<8x32xf32>
    %450 = vector.shape_cast %447 : vector<8x32xf32> to vector<1x8x32xf32>
    tpu.vector_store %arg14[%c0_116, %c0_117, %c0_118], %450 {strides = array<i32>} : memref<1x8x32xf32, #tpu.memory_space<vmem>>, vector<1x8x32xf32>,
    return
  }
  func.func @transform_0(%arg0: i32, %arg1: i32) -> (i32, i32, i32) {
    %c0_i32 = arith.constant 0 : i32
    %c0_i32_0 = arith.constant 0 : i32
    return %arg0, %arg1, %c0_i32 : i32, i32, i32
  }
  func.func @transform_1(%arg0: i32, %arg1: i32) -> (i32, i32, i32) {
    %c0_i32 = arith.constant 0 : i32
    %c0_i32_0 = arith.constant 0 : i32
    %c0_i32_1 = arith.constant 0 : i32
    return %arg0, %c0_i32, %c0_i32_0 : i32, i32, i32
  }
  func.func @transform_2(%arg0: i32, %arg1: i32) -> (i32, i32, i32) {
    %c0_i32 = arith.constant 0 : i32
    %c0_i32_0 = arith.constant 0 : i32
    %c0_i32_1 = arith.constant 0 : i32
    return %arg0, %c0_i32, %c0_i32_0 : i32, i32, i32
  }
  func.func @transform_3(%arg0: i32, %arg1: i32) -> (i32, i32, i32) {
    %c0_i32 = arith.constant 0 : i32
    %c0_i32_0 = arith.constant 0 : i32
    return %arg0, %arg1, %c0_i32 : i32, i32, i32
  }
  func.func @transform_4(%arg0: i32, %arg1: i32) -> (i32, i32, i32) {
    %c0_i32 = arith.constant 0 : i32
    %c0_i32_0 = arith.constant 0 : i32
    return %arg0, %arg1, %c0_i32 : i32, i32, i32
  }
  func.func @transform_5(%arg0: i32, %arg1: i32) -> (i32, i32, i32) {
    %c0_i32 = arith.constant 0 : i32
    %c0_i32_0 = arith.constant 0 : i32
    %c0_i32_1 = arith.constant 0 : i32
    return %arg0, %c0_i32, %c0_i32_0 : i32, i32, i32
  }
  func.func @transform_6(%arg0: i32, %arg1: i32) -> (i32, i32) {
    %c0_i32 = arith.constant 0 : i32
    %c0_i32_0 = arith.constant 0 : i32
    %c0_i32_1 = arith.constant 0 : i32
    return %c0_i32, %c0_i32_0 : i32, i32
  }
  func.func @transform_7(%arg0: i32, %arg1: i32) -> (i32, i32) {
    %c0_i32 = arith.constant 0 : i32
    %c0_i32_0 = arith.constant 0 : i32
    %c0_i32_1 = arith.constant 0 : i32
    return %c0_i32, %c0_i32_0 : i32, i32
  }
  func.func @transform_8(%arg0: i32, %arg1: i32) -> (i32, i32) {
    %c0_i32 = arith.constant 0 : i32
    %c0_i32_0 = arith.constant 0 : i32
    %c0_i32_1 = arith.constant 0 : i32
    return %c0_i32, %c0_i32_0 : i32, i32
  }
  func.func @transform_9(%arg0: i32, %arg1: i32) -> (i32, i32) {
    %c0_i32 = arith.constant 0 : i32
    %c0_i32_0 = arith.constant 0 : i32
    %c0_i32_1 = arith.constant 0 : i32
    return %c0_i32, %c0_i32_0 : i32, i32
  }
  func.func @transform_10(%arg0: i32, %arg1: i32) -> (i32, i32) {
    %c0_i32 = arith.constant 0 : i32
    %c0_i32_0 = arith.constant 0 : i32
    %c0_i32_1 = arith.constant 0 : i32
    return %c0_i32, %c0_i32_0 : i32, i32
  }
  func.func @transform_11(%arg0: i32, %arg1: i32) -> (i32, i32) {
    %c0_i32 = arith.constant 0 : i32
    %c0_i32_0 = arith.constant 0 : i32
    %c0_i32_1 = arith.constant 0 : i32
    return %c0_i32, %c0_i32_0 : i32, i32
  }
  func.func @transform_12(%arg0: i32, %arg1: i32) -> (i32, i32, i32) {
    %c0_i32 = arith.constant 0 : i32
    %c0_i32_0 = arith.constant 0 : i32
    return %arg0, %arg1, %c0_i32 : i32, i32, i32
  }
  func.func @transform_13(%arg0: i32, %arg1: i32) -> (i32, i32, i32, i32) {
    %c0_i32 = arith.constant 0 : i32
    %c0_i32_0 = arith.constant 0 : i32
    %c0_i32_1 = arith.constant 0 : i32
    return %arg0, %c0_i32, %arg1, %c0_i32_0 : i32, i32, i32, i32
  }
}

</mosaic_0001>

<bundles_post_ra>
// kernel: tpu_custom_call.1
= control target key start
LH: loop header
LB: loop body
LE: loop exit
PB: predicated region body
PF: predicated region fallthrough
CT: control target
= control target key end

     0   :  { %s2983_s0 = inlined_call_operand.vmem [shape: f32[2,8,32], index: 0, kind: input, shape index: {}]   ;;  %s2984_s1 = inlined_call_operand.hbm [shape: bf16[2,8,32], index: 1, kind: input, shape index: {}]   ;;  %s2985_s2 = inlined_call_operand.hbm [shape: bf16[2,8,128], index: 2, kind: input, shape index: {}]   ;;  %s2986_s3 = inlined_call_operand.hbm [shape: s8[2,8,8], index: 3, kind: input, shape index: {}]   ;;  %s2987_s4 = inlined_call_operand.vmem [shape: f32[2,8,8], index: 4, kind: input, shape index: {}]   ;;  %s2988_s5 = inlined_call_operand.hbm [shape: f32[2,1,8], index: 5, kind: input, shape index: {}]   ;;  %s2989_s6 = inlined_call_operand.vmem [shape: bf16[32,72], index: 6, kind: input, shape index: {}]   ;;  %s2990_s7 = inlined_call_operand.hbm [shape: f32[1,72], index: 7, kind: input, shape index: {}]   ;;  %s2991_s8 = inlined_call_operand.hbm [shape: bf16[32,64], index: 8, kind: input, shape index: {}]   ;;  %s2992_s9 = inlined_call_operand.hbm [shape: f32[1,64], index: 9, kind: input, shape index: {}]   ;;  %s2993_s10 = inlined_call_operand.vmem [shape: bf16[64,32], index: 10, kind: input, shape index: {}]   ;;  %s2994_s11 = inlined_call_operand.vmem [shape: f32[8,32], index: 11, kind: input, shape index: {}]   ;;  %s2995_s12 = inlined_call_operand.hbm [shape: f32[2,8,32], index: 12, kind: output, shape index: {0}]   ;;  %s2996_s13 = inlined_call_operand.hbm [shape: bf16[2,4,8,8], index: 13, kind: output, shape index: {1}]  }
   0x1   :  { %3007 = sst [smem:[#allocation30_spill]] %s2984_s1 }
   0x2   :  { %3008 = sst [smem:[#allocation31_spill]] %s2985_s2 }
   0x3   :  { %3009 = sst [smem:[#allocation32_spill]] %s2987_s4 }
   0x4   :  { %3010 = sst [smem:[#allocation33_spill]] %s2990_s7 }
   0x5   :  { %3011 = sst [smem:[#allocation34_spill]] %s2991_s8 }
   0x6   :  { %3012 = sst [smem:[#allocation35_spill]] %s2993_s10 }
   0x7   :  { %3013 = sst [smem:[#allocation36_spill]] %s2994_s11 }
   0x8   :  { %3014 = sst [smem:[#allocation37_spill]] %s2995_s12 }
   0x9   :  { %3015 = sst [smem:[#allocation38_spill]] %s2996_s13 }
   0xa   :  { %19 = vsyncpa [#allocation3], 0 }
   0xb   :  { %21 = vsyncpa [#allocation3 + $0x1], 0 }
   0xc   :  { %22 = vsyncpa [#allocation6], 0 }
   0xd   :  { %24 = vsyncpa [#allocation6 + $0x1], 0 }
   0xe   :  { %25 = vsyncpa [#allocation9], 0 }
   0xf   :  { %27 = vsyncpa [#allocation9 + $0x1], 0 }
  0x10   :  { %28 = vsyncpa [#allocation12], 0 }
  0x11   :  { %29 = vsyncpa [#allocation4], 0 }
  0x12   :  { %31 = vsyncpa [#allocation4 + $0x1], 0 }
  0x13   :  { %32 = vsyncpa [#allocation16], 0 }
  0x14   :  { %34 = vsyncpa [#allocation16 + $0x1], 0  ;;  %s2457_s25 = smov 0   ;;  %s2459_s26 = smov 0  }
  0x15   :  { %s2461_s27 = smov 0   ;;  %s2463_s28 = smov 0  }
  0x16   :  { %s2465_s29 = smov 0   ;;  %s2467_s30 = smov 0  }
  0x17 LB: > { %3016 = sst [smem:[#allocation24_spill]] %s2311_s25  ;;  %s2488_s14 = sadd.s32 4294967295, %s2331_s30   ;;  %s2331_s30 = sphi %s2467_s30, %s40_s30   ;;  %s2327_s29 = sphi %s2465_s29, %s3048_s29   ;;  %s2323_s28 = sphi %s2463_s28, %s3047_s28   ;;  %s2319_s27 = sphi %s2461_s27, %s3043_s27   ;;  %s2315_s26 = sphi %s2459_s26, %s3046_s26   ;;  %s2311_s25 = sphi %s2457_s25, %s3045_s25  }
  0x18   : > { %3017 = sst [smem:[#allocation25_spill]] %s2319_s27  ;;  %s1676_s15 = sadd.s32 4294967294, %s2331_s30  }
  0x19   : > { %p100_p0 = scmp.ne.s32.totalorder %s2315_s26, %s2311_s25  ;;  %p101_p1 = scmp.eq.s32.totalorder %s2488_s14, 0 }
  0x1a   : > { %p360_p2 = scmp.eq.s32.totalorder %s2488_s14, 1  ;;  %p366_p3 = scmp.eq.s32.totalorder %s1676_s15, 1 }
  0x1b   : > { %p2497_p4 = por %p101_p1, %p100_p0  ;;  %p1677_p5 = scmp.ge.s32.totalorder %s2331_s30, 1 }
  0x1c   : > { %p2502_p6 = por %p366_p3, %p100_p0  ;;  %p401_p7 = scmp.lt.s32.totalorder %s2331_s30, 3 }
  0x1d   : > { %s3021_s7 = sld [smem:[#allocation33_spill]]  ;;  %s2333_s22 = smov [#allocation10]  }
  0x1e   : > { %s3019_s17 = scalar_select %p2502_p6, 1, 0 }
  0x1f   : > { %p2510_p8 = pnand %p1677_p5, %p401_p7  ;;  %s418_s23 = sshll.u32 %s2333_s22, 4  ;;  %s419_s23 = int_to_ptr.vmem [resolvable:$true] %s418_s23 }
  0x20   : > { %3020 = sst [smem:[#allocation26_spill]] %s3019_s17  ;;  %s2335_s22 = smov 64  }
  0x21   : > { %p1785_p10 = pneg %p2510_p8  ;;  %s3023_s8 = sld [smem:[#allocation34_spill]] }
  0x22   : > { %s2336_s24 = smov 4   ;;  %s52_s15 = sadd.s32 1, %s2327_s29 }
  0x23   : > { %s416_s20 = sshll.u32 %s3021_s7, 4  ;;  %p2522_p11 = pnand %p1785_p10, %p101_p1  ;;  %s417_s20 = int_to_ptr.hbm [resolvable:$true] %s416_s20 }
  0x24   : > { %s2334_s7 = smov [#allocation11]   ;;  %p54_p12 = scmp.ge.s32.totalorder %s52_s15, 2 }
  0x25   : > { %s429_s17 = sshll.u32 %s2334_s7, 4  ;;  %p94_p13 = scmp.ne.s32.totalorder %s2319_s27, %s2315_s26  ;;  %s430_s17 = int_to_ptr.vmem [resolvable:$true] %s429_s17 }
  0x26   : > { %1788 = dma.hbm_to_vmem [thread:$0]  (!%p2522_p11), %s417_s20, 16, %s419_s23, [#allocation9]  }
  0x27   : > { %s427_s18 = sshll.u32 %s3023_s8, 4  ;;  %s87_s8 = sadd.s32 1, %s2319_s27  ;;  %s428_s18 = int_to_ptr.hbm [resolvable:$true] %s427_s18 }
  0x28   : > { %1791 = dma.hbm_to_vmem [thread:$0]  (!%p2522_p11), %s428_s18, 256, %s430_s17, [#allocation12], %s2335_s22, %s2335_s22, %s2336_s24  }
  0x29   : > { %p95_p0 = scmp.eq.s32.totalorder %s2331_s30, 0  ;;  %p1818_p3 = scmp.lt.s32.totalorder %s2331_s30, 2 }
  0x2a   : > { %s3050_s15 = smov (%p54_p12, %s52_s15), 0  ;;  %p2540_p7 = por %p360_p2, %p94_p13 }
  0x2b   : > { %3025 = sst [smem:[#allocation27_spill]] %s3050_s15  ;;  %p96_p5 = por %p95_p0, %p94_p13 }
  0x2c   : > { %s3026_s7 = scalar_select %p2540_p7, 1, 0 }
  0x2d   : > { %s84_s20 = ssub.s32 %s2327_s29, %s3050_s15  ;;  %s2547_s17 = sand.u32 1, %s2319_s27  }
  0x2e   : > { %3027 = sst [smem:[#allocation28_spill]] %s3026_s7  ;;  %p85_p10 = scmp.eq.s32.totalorder %s84_s20, 0 }
  0x2f   : > { %s1682_s23 = sshll.u32 %s2547_s17, 2  ;;  %s1683_s18 = sshll.u32 %s2327_s29, 2 }
  0x30   : > { %p2551_p9 = pnand %p1818_p3, %p96_p5  ;;  %s3005_s25 = sand.u32 1, %s2331_s30  }
  0x31   : > { %s2556_s24 = scalar_select %p85_p10, %s2319_s27, %s87_s8  }
  0x32   : > { %s3030_s2 = sld [smem:[#allocation31_spill]]  ;;  %s494_s15 = scalar_lea.vmem [#allocation5], %s1682_s23 }
  0x33   : > { %3029 = sst [smem:[#allocation29_spill]] %s2556_s24  ;;  %s502_s10 = sshll.u32 %s494_s15, 4  ;;  %s503_s10 = int_to_ptr.vmem [resolvable:$true] %s502_s10 }
  0x34   : > { %s491_s20 = scalar_lea.sflag [#allocation6], %s3005_s25  ;;  %s442_s24 = sshll.u32 %s2992_s9, 4  ;;  %s443_s24 = int_to_ptr.hbm [resolvable:$true] %s442_s24 }
  0x35   : > { %s2337_s12 = smov [#allocation13]   ;;  %s3031_s1 = sld [smem:[#allocation30_spill]] }
  0x36   : > { %s444_s13 = sshll.u32 %s2337_s12, 4  ;;  %s475_s27 = scalar_lea.vmem [#allocation2], %s1682_s23  ;;  %s445_s13 = int_to_ptr.vmem [resolvable:$true] %s444_s13 }
  0x37   : > { %1794 = dma.hbm_to_vmem [thread:$0]  (!%p2522_p11), %s443_s24, 16, %s445_s13, [#allocation12]  }
  0x38   : > { %s498_s7 = scalar_lea.hbm %s3030_s2, %s1683_s18  ;;  %s472_s4 = scalar_lea.sflag [#allocation3], %s2547_s17 }
  0x39   : > { %s500_s11 = sshll.u32 %s498_s7, 4  ;;  %s1687_s19 = sshll.u32 %s2327_s29, 1  ;;  %s501_s11 = int_to_ptr.hbm [resolvable:$true] %s500_s11 }
  0x3a   : > { %1801 = dma.hbm_to_vmem [thread:$0]  (!%p2551_p9), %s501_s11, 64, %s503_s10, %s491_s20  }
  0x3b   : > { %s479_s2 = scalar_lea.hbm %s3031_s1, %s1683_s18  ;;  %s483_s10 = sshll.u32 %s475_s27, 4  ;;  %s484_s10 = int_to_ptr.vmem [resolvable:$true] %s483_s10 }
  0x3c   : > { %s481_s25 = sshll.u32 %s479_s2, 4  ;;  %s1686_s11 = sshll.u32 %s2547_s17, 1  ;;  %s482_s25 = int_to_ptr.hbm [resolvable:$true] %s481_s25 }
  0x3d   : > { %1798 = dma.hbm_to_vmem [thread:$0]  (!%p2551_p9), %s482_s25, 64, %s484_s10, %s472_s4  }
  0x3e   : > { %s518_s12 = scalar_lea.hbm %s2986_s3, %s1687_s19  ;;  %s513_s13 = scalar_lea.vmem [#allocation7], %s1686_s11 }
  0x3f   : > { %s520_s18 = sshll.u32 %s518_s12, 4  ;;  %s522_s2 = sshll.u32 %s513_s13, 4  ;;  %s521_s18 = int_to_ptr.hbm [resolvable:$true] %s520_s18  ;;  %s523_s2 = int_to_ptr.vmem [resolvable:$true] %s522_s2 }
  0x40   : > { %1804 = dma.hbm_to_vmem [thread:$0]  (!%p2551_p9), %s521_s18, 32, %s523_s2, %s491_s20  }
  0x41   : > { %s545_s15 = scalar_lea.hbm %s2988_s5, %s2327_s29  ;;  %s542_s7 = scalar_lea.vmem [#allocation8], %s2547_s17 }
  0x42   : > { %s547_s25 = sshll.u32 %s545_s15, 4  ;;  %s549_s10 = sshll.u32 %s542_s7, 4  ;;  %s548_s25 = int_to_ptr.hbm [resolvable:$true] %s547_s25  ;;  %s550_s10 = int_to_ptr.vmem [resolvable:$true] %s549_s10 }
  0x43   : > { %s3032_s4 = sand.u32 1, %s2331_s30   ;;  %558 = sbr.rel (%p2510_p8) target bundleno = 1735 (0x6c7), region = 68 }
  0x44   : > { %s540_s1 = scalar_lea.sflag [#allocation9], %s3032_s4  ;;  %s2596_s11 = sand.u32 (!%p2510_p8), 1, %s2315_s26  }
  0x45   : > { %1807 = dma.hbm_to_vmem [thread:$0]  (!%p2551_p9), %s548_s25, 16, %s550_s10, %s540_s1  }
  0x46   : > { %s1689_s20 = sshll.u32 (!%p2510_p8), %s2596_s11, 2  ;;  %s561_s19 = scalar_lea.sflag (!%p2510_p8), [#allocation3], %s2596_s11 }
  0x47   : > { %s564_s24 = scalar_lea.vmem (!%p2510_p8), [#allocation2], %s1689_s20 }
  0x48   : > { %2282 = dma.done.wait (%p2497_p4), %s561_s19, 64  }
  0x49   : > { %2284 = vsyncadd (%p2497_p4), %s561_s19, 4294967232  ;;  %s570_s1 = sand.u32 1, %s2488_s14   ;;  %s2605_s21 = scalar_lea.vmem [#allocation5], %s1689_s20 }
  0x4a   : > { %s571_s17 = scalar_lea.sflag [#allocation6], %s570_s1 }
  0x4b   : > { %2286 = dma.done.wait (%p2497_p4), %s571_s17, 96  }
  0x4c   : > { %2288 = vsyncadd (%p2497_p4), %s571_s17, 4294967200  ;;  %s1691_s22 = sshll.u32 %s2596_s11, 1  ;;  %s591_s12 = scalar_lea.sflag [#allocation9], %s570_s1 }
  0x4d   : > { %s2612_s8 = scalar_lea.vmem [#allocation7], %s1691_s22  ;;  %s593_s18 = scalar_lea.vmem [#allocation8], %s2596_s11 }
  0x4e   : > { %2290 = dma.done.wait (%p2497_p4), %s591_s12, 16  }
  0x4f   : > { %2292 = vsyncadd (%p2497_p4), %s591_s12, 4294967280 }
  0x50   : > { %2294 = dma.done.wait (%p101_p1), [#allocation9], 16  }
  0x51   : > { %2296 = vsyncadd (%p101_p1), [#allocation9], 4294967280 }
  0x52   : > { %2298 = dma.done.wait (%p101_p1), [#allocation12], 272  }
  0x53   : > { %2300 = vsyncadd (%p101_p1), [#allocation12], 4294967024  ;;  %p685_p2 = scmp.lt.s32.totalorder %s2323_s28, 1  ;;  %vm760_vm0 = vcmask 64512   ;;  %v1753_v0 = vld [vmem:[%s2989_s6 + $0x8] sm:$0xff]  ;;  %v1752_v2 = vld [vmem:[%s2989_s6] sm:$0xff] }
  0x54   : > { %v701_v1 = vld [vmem:[%s564_s24] sm:$0xf]  ;;  %738 = vmatpush.bf16.msra.mxu0 %v1753_v0  ;;  %vm728_vm1 = vcmask 261120   ;;  %s2338_s10 = smov 112   ;;  %s2339_s4 = smov 104   ;;  %v2341_v8 = vmov 32  }
  0x55   : > { %s2629_s13 = scalar_select %p685_p2, %s2323_s28, 1  ;;  %v791_v4 = vunpack.c.l.b16 %v701_v1  ;;  %v765_v5 = vsel %vm760_vm0, %v701_v1, 0  ;;  %1925 = vset.pattern.permute.xlu0 %v2341_v8  ;;  %v2342_v9 = vmov 33   ;;  %v2343_v10 = vmov 52   ;;  %v1966_v11 = vld [vmem:[#allocation10] ss:$0 sm:$0xff] }
  0x56   : > { %774 = vmatpush.bf16.xpose.msra.mxu1 %v765_v5  ;;  %s2340_s20 = smov 120   ;;  %1927 = vset.pattern.permute.xlu2 %v2342_v9  ;;  %v2344_v18 = vmov 42   ;;  %v2345_v19 = vmov 36   ;;  %v2346_v20 = vmov 34   ;;  %v2347_v21 = vmov 63   ;;  %s3033_s1 = sld [smem:[#allocation32_spill]] }
  0x57   : > { %s1697_s16 = sshll.u32 %s2629_s13, 3  ;;  %v792_v6 = vpack.c.b16 %v791_v4, %v791_v4  ;;  %1926 = vset.pattern.permute.xlu1 %v2343_v10  ;;  %v2348_v22 = vmov 53   ;;  %v2349_v23 = vmov 35   ;;  %v2350_v24 = vmov 46   ;;  %s2382_s22 = smov 64  }
  0x58   : > { %s691_s23 = scalar_lea.vmem %s2983_s0, %s1697_s16  ;;  %739 = vmatpush.bf16.msra.mxu0 %v1752_v2  ;;  %v2351_v25 = vmov 54   ;;  %v2352_v26 = vmov 55   ;;  %v2353_v27 = vmov 59   ;;  %v2354_v28 = vmov 43   ;;  %s1696_s12 = sshll.u32 %s2596_s11, 4 }
  0x59   : > { %v2643_v3 = vld [vmem:[%s691_s23] sm:$0xff]  ;;  %821 = vrot.lane.b32.xlu0 %v792_v6, %s2338_s10  ;;  %849 = vrot.lane.b32.xlu2 %v792_v6, %s2339_s4  ;;  %v2355_v29 = vmov 44   ;;  %v2356_v30 = vmov 41   ;;  %v2357_v33 = vmov 62   ;;  %v2358_v34 = vmov 37   ;;  %s3034_s2 = sld [smem:[#allocation36_spill]] }
  0x5a   : > { %v707_v7 = vpack.c.bf16 %v2643_v3, %v2643_v3  ;;  %v2359_v35 = vmov 50   ;;  %v2360_v36 = vmov 56   ;;  %v2361_v37 = vmov 57   ;;  %s3035_s15 = sld [smem:[#allocation35_spill]]  ;;  %s1760_s24 = sshll.u32 %s2323_s28, 4 }
  0x5b   : > { %v2362_v38 = vmov 45   ;;  %v2363_v39 = vmov 64   ;;  %v2364_v42 = vmov 38   ;;  %v2365_v43 = vmov 39  }
  0x5c   : > { %1707 = vmatmul.msk.bf16.vlgmr.msra.gmra.mxu0 %vm728_vm1, %v707_v7  ;;  %v2366_v46 = vmov 58   ;;  %v2367_v47 = vmov 47   ;;  %v2368_v49 = vmov 65   ;;  %v2369_v50 = vmov 66   ;;  %s698_s17 = scalar_lea.vmem %s3033_s1, %s1697_s16  ;;  %s1406_s16 = scalar_lea.sflag [#allocation16], %s2596_s11 }
  0x5d   : > { %v2370_v51 = vmov 40   ;;  %v2371_v52 = vmov 60   ;;  %v2372_v53 = vmov 71   ;;  %v2373_v54 = vmov 48  }
  0x5e   : > { %v2374_v57 = vmov 49   ;;  %v2375_v60 = vmov 67   ;;  %v2376_v61 = vmov 68   ;;  %v2377_v1 = vmov 61  }
  0x5f   : > { %v2378_v2 = vmov 51   ;;  %v2380_v9 = vmov 70   ;;  %vm1135_vm13 = vcmask 1043456   ;;  %vm1109_vm14 = vcmask 60416  }
  0x61   : > { %793 = vrot.lane.b32.xlu0 %v792_v6, %s2340_s20  ;;  %v2379_v6 = vmov 69  }
  0xb3   : > { %v850_v31 = vpop.permute.xlu2 %849 }
  0xb4   : > { %v855_v32 = vsel %vm760_vm0, %v850_v31, 0 }
  0xb5   : > { %864 = vmatpush.bf16.xpose.msrb.mxu0 %v855_v32 }
  0xcb   : > { %v822_v40 = vpop.permute.xlu0 %821 }
  0xcc   : > { %v827_v41 = vsel %vm760_vm0, %v822_v40, 0 }
  0xcd   : > { %836 = vmatpush.bf16.xpose.msra.mxu3 %v827_v41 }
  0xd3   : > { %v794_v44 = vpop.permute.xlu0 %793 }
  0xd4   : > { %v799_v45 = vsel %vm760_vm0, %v794_v44, 0 }
  0xd5   : > { %808 = vmatpush.bf16.xpose.msra.mxu2 %v799_v45 }
  0xd9   : > { %v741_v12 = vpop.f32.mrf.mxu0 }
  0xda   : > { %v2649_v13 = vadd.f32 %v1966_v11, %v741_v12 }
  0xdc   : > { %756 = vperm.xlu0 %1925, %v2649_v13   ;;  %v752_v14 = vpack.c.bf16 %v2649_v13, %v2649_v13 }
  0xde   : > { %1708 = vmatmul.msk.bf16.vlgmr.msra.gmra.mxu1 %vm760_vm0, %v752_v14  ;;  %v786_v15 = vunpack.c.l.b16 %v752_v14 }
  0xe0   : > { %v787_v16 = vpack.c.b16 %v786_v15, %v786_v15 }
  0xe1   : > { %v743_v17 = vpop.f32.mrf.mxu0 }
  0xe2   : > { %847 = vrot.lane.b32.xlu2 %v787_v16, %s2339_s4  ;;  %819 = vrot.lane.b32.xlu1 %v787_v16, %s2338_s10 }
  0xe4   : > { %1930 = vset.pattern.permute.xlu0 %v2344_v18 }
  0xe5   : > { %781 = vperm.xlu0 %1930, %v2649_v13  }
  0xea   : > { %872 = vperm.xlu2 %1927, %v2649_v13   ;;  %788 = vrot.lane.b32.xlu1 %v787_v16, %s2340_s20 }
  0xed   : > { %1935 = vset.pattern.permute.xlu0 %v2345_v19 }
  0xee   : > { %947 = vperm.xlu0 %1935, %v2649_v13  }
  0xf2   : > { %1929 = vset.pattern.permute.xlu2 %v2346_v20  ;;  %815 = vperm.xlu1 %1926, %v2649_v13  }
  0xf3   : > { %897 = vperm.xlu2 %1929, %v2649_v13  }
  0xf6   : > { %1940 = vset.pattern.permute.xlu0 %v2347_v21 }
  0xf7   : > { %890 = vperm.xlu0 %1940, %v2649_v13  }
  0xfa   : > { %1928 = vset.pattern.permute.xlu1 %v2348_v22  ;;  %v703_v22 = vld [vmem:[%s2612_s8] sm:$0x3]  ;;  %s2384_s8 = smov 32  }
  0xfb   : > { %1932 = vset.pattern.permute.xlu2 %v2349_v23  ;;  %884 = vperm.xlu1 %1928, %v2649_v13  }
  0xfc   : > { %922 = vperm.xlu2 %1932, %v2649_v13  }
  0xff   : > { %1945 = vset.pattern.permute.xlu0 %v2350_v24 }
 0x100   : > { %953 = vperm.xlu0 %1945, %v2649_v13  }
 0x103   : > { %1931 = vset.pattern.permute.xlu1 %v2351_v25 }
 0x104   : > { %1934 = vset.pattern.permute.xlu2 %v2352_v26  ;;  %909 = vperm.xlu1 %1931, %v2649_v13  }
 0x105   : > { %934 = vperm.xlu2 %1934, %v2649_v13  }
 0x108   : > { %1950 = vset.pattern.permute.xlu0 %v2353_v27 }
 0x109   : > { %1034 = vperm.xlu0 %1950, %v2649_v13  }
 0x10c   : > { %1933 = vset.pattern.permute.xlu1 %v2354_v28 }
 0x10d   : > { %1937 = vset.pattern.permute.xlu2 %v2355_v29  ;;  %878 = vperm.xlu1 %1933, %v2649_v13  }
 0x10e   : > { %903 = vperm.xlu2 %1937, %v2649_v13  }
 0x111   : > { %1955 = vset.pattern.permute.xlu0 %v2356_v30 }
 0x112   : > { %1072 = vperm.xlu0 %1955, %v2649_v13  }
 0x115   : > { %1936 = vset.pattern.permute.xlu1 %v2357_v33 }
 0x116   : > { %1939 = vset.pattern.permute.xlu2 %v2358_v34  ;;  %843 = vperm.xlu1 %1936, %v2649_v13  }
 0x117   : > { %972 = vperm.xlu2 %1939, %v2649_v13  }
 0x11a   : > { %1960 = vset.pattern.permute.xlu0 %v2359_v35 }
 0x11b   : > { %1053 = vperm.xlu0 %1960, %v2649_v13  }
 0x11e   : > { %1938 = vset.pattern.permute.xlu1 %v2360_v36 }
 0x11f   : > { %1942 = vset.pattern.permute.xlu2 %v2361_v37  ;;  %959 = vperm.xlu1 %1938, %v2649_v13  }
 0x120   : > { %984 = vperm.xlu2 %1942, %v2649_v13  }
 0x123   : > { %1965 = vset.pattern.permute.xlu0 %v2372_v53 }
 0x127   : > { %1941 = vset.pattern.permute.xlu1 %v2362_v38 }
 0x128   : > { %1944 = vset.pattern.permute.xlu2 %v2363_v39  ;;  %928 = vperm.xlu1 %1941, %v2649_v13  }
 0x129   : > { %915 = vperm.xlu2 %1944, %v2649_v13  }
 0x130   : > { %1943 = vset.pattern.permute.xlu1 %v2364_v42 }
 0x131   : > { %1947 = vset.pattern.permute.xlu2 %v2365_v43  ;;  %997 = vperm.xlu1 %1943, %v2649_v13  }
 0x132   : > { %1022 = vperm.xlu2 %1947, %v2649_v13  }
 0x139   : > { %1946 = vset.pattern.permute.xlu1 %v2366_v46 }
 0x13a   : > { %1949 = vset.pattern.permute.xlu2 %v2367_v47  ;;  %1009 = vperm.xlu1 %1946, %v2649_v13  }
 0x13b   : > { %978 = vperm.xlu2 %1949, %v2649_v13  }
 0x13c   : > { %v848_v48 = vpop.permute.xlu2 %847 }
 0x13d   : > { %1711 = vmatmul.msk.bf16.vlgmr.msrb.gmra.mxu0 %vm760_vm0, %v848_v48 }
 0x142   : > { %1948 = vset.pattern.permute.xlu1 %v2368_v49 }
 0x143   : > { %1952 = vset.pattern.permute.xlu2 %v2369_v50  ;;  %940 = vperm.xlu1 %1948, %v2649_v13   ;;  %v1967_v50 = vld [vmem:[%s593_s18] ss:$0 sm:$0xff]  ;;  %s2873_s18 = scalar_lea.vmem [#allocation15], %s1696_s12 }
 0x144   : > { %965 = vperm.xlu2 %1952, %v2649_v13   ;;  %v873_v56 = vpop.permute.xlu2 %872  ;;  %vm748_vm12 = vcmp.gt.f32.partialorder %v1967_v50, 0.5  ;;  %s1434_s12 = sshll.u32 %s2873_s18, 4  ;;  %s1435_s12 = int_to_ptr.vmem [resolvable:$true] %s1434_s12 }
 0x14b   : > { %1951 = vset.pattern.permute.xlu1 %v2370_v51  ;;  %v750_v51 = vld [vmem:[%s698_s17] sm:$0xff] }
 0x14c   : > { %1954 = vset.pattern.permute.xlu2 %v2371_v52  ;;  %1047 = vperm.xlu1 %1951, %v2649_v13  }
 0x14d   : > { %1059 = vperm.xlu2 %1954, %v2649_v13   ;;  %v898_v62 = vpop.permute.xlu2 %897 }
 0x14e   : > { %v757_v12 = vpop.permute.xlu0 %756 }
 0x154   : > { %1953 = vset.pattern.permute.xlu1 %v2373_v54  ;;  %v820_v55 = vpop.permute.xlu1 %819 }
 0x155   : > { %1957 = vset.pattern.permute.xlu2 %v2374_v57  ;;  %1003 = vperm.xlu1 %1953, %v2649_v13  }
 0x156   : > { %1710 = vmatmul.msk.bf16.vlgmr.msra.gmra.mxu3 %vm760_vm0, %v820_v55  ;;  %1028 = vperm.xlu2 %1957, %v2649_v13   ;;  %v923_v4 = vpop.permute.xlu2 %922 }
 0x157   : > { %v2712_v16 = vpop.permute.xlu0 %781 }
 0x15b   : > { %v776_v58 = vpop.f32.mrf.mxu1 }
 0x15c   : > { %v789_v59 = vpop.permute.xlu1 %788 }
 0x15d   : > { %1956 = vset.pattern.permute.xlu1 %v2375_v60  ;;  %1709 = vmatmul.msk.bf16.vlgmr.msra.gmra.mxu2 %vm760_vm0, %v789_v59 }
 0x15e   : > { %1959 = vset.pattern.permute.xlu2 %v2376_v61  ;;  %990 = vperm.xlu1 %1956, %v2649_v13  }
 0x15f   : > { %1015 = vperm.xlu2 %1959, %v2649_v13   ;;  %v2703_v7 = vpop.permute.xlu2 %934 }
 0x160   : > { %v948_v19 = vpop.permute.xlu0 %947 }
 0x163   : > { %v778_v63 = vpop.f32.mrf.mxu1 }
 0x164   : > { %v2695_v0 = vpop.permute.xlu1 %815 }
 0x166   : > { %1958 = vset.pattern.permute.xlu1 %v2377_v1  ;;  %v2381_v1 = vmov 0.0  }
 0x167   : > { %1962 = vset.pattern.permute.xlu2 %v2378_v2  ;;  %1084 = vperm.xlu1 %1958, %v2649_v13   ;;  %v2776_v2 = vsel %vm748_vm12, -1e+30, %v2381_v1 }
 0x168   : > { %1078 = vperm.xlu2 %1962, %v2649_v13   ;;  %v2708_v10 = vpop.permute.xlu2 %903 }
 0x169   : > { %v891_v23 = vpop.permute.xlu0 %890 }
 0x16d   : > { %v2699_v5 = vpop.permute.xlu1 %884 }
 0x16f   : > { %1961 = vset.pattern.permute.xlu1 %v2379_v6 }
 0x170   : > { %1964 = vset.pattern.permute.xlu2 %v2372_v53  ;;  %1040 = vperm.xlu1 %1961, %v2649_v13  }
 0x171   : > { %1090 = vperm.xlu2 %1964, %v2649_v13   ;;  %v973_v14 = vpop.permute.xlu2 %972 }
 0x172   : > { %v2732_v30 = vpop.permute.xlu0 %953 }
 0x176   : > { %v2705_v8 = vpop.permute.xlu1 %909 }
 0x178   : > { %1963 = vset.pattern.permute.xlu1 %v2380_v9 }
 0x179   : > { %1065 = vperm.xlu1 %1963, %v2649_v13   ;;  %v2723_v13 = vunpack.c.0.s8 %v703_v22 }
 0x17a   : > { %v2714_v17 = vpop.permute.xlu2 %984 }
 0x17b   : > { %vm753_vm2 = vcmp.eq.s32.totalorder %v2723_v13, 0  ;;  %vm870_vm3 = vcmp.eq.s32.totalorder %v2723_v13, 1  ;;  %vm895_vm4 = vcmp.eq.s32.totalorder %v2723_v13, 2  ;;  %vm920_vm5 = vcmp.eq.s32.totalorder %v2723_v13, 3  ;;  %v2745_v37 = vpop.permute.xlu0 %1034 }
 0x17c   : > { %v759_v25 = vsel %vm753_vm2, %v757_v12, 0.0  ;;  %v875_v28 = vsel %vm870_vm3, %v873_v56, 0.0  ;;  %v900_v32 = vsel %vm895_vm4, %v898_v62, 0.0  ;;  %v925_v35 = vsel %vm920_vm5, %v923_v4, 0.0 }
 0x17d   : > { %v777_v27 = vadd.f32 %v776_v58, %v759_v25  ;;  %vm945_vm6 = vcmp.eq.s32.totalorder %v2723_v13, 4  ;;  %vm970_vm7 = vcmp.eq.s32.totalorder %v2723_v13, 5  ;;  %vm995_vm8 = vcmp.eq.s32.totalorder %v2723_v13, 6 }
 0x17e   : > { %v950_v38 = vsel %vm945_vm6, %v948_v19, 0.0  ;;  %v975_v39 = vsel %vm970_vm7, %v973_v14, 0.0  ;;  %v893_v49 = vsel %vm870_vm3, %v891_v23, 0.0  ;;  %vm1020_vm9 = vcmp.eq.s32.totalorder %v2723_v13, 7 }
 0x17f   : > { %v2710_v11 = vpop.permute.xlu1 %878  ;;  %v876_v29 = vadd.f32 %v875_v28, %v777_v27  ;;  %vm1070_vm10 = vcmp.eq.s32.totalorder %v2723_v13, 9  ;;  %vm1045_vm11 = vcmp.eq.s32.totalorder %v2723_v13, 8  ;;  %v2772_v58 = vmul.f32 0.35355338, %v750_v51 }
 0x180   : > { %v818_v22 = vsel %vm753_vm2, %v2695_v0, 0.0  ;;  %v887_v27 = vsel %vm870_vm3, %v2699_v5, 0.0 }
 0x181   : > { %v901_v33 = vadd.f32 %v900_v32, %v876_v29  ;;  %v912_v32 = vsel %vm895_vm4, %v2705_v8, 0.0 }
 0x183   : > { %v2720_v21 = vpop.permute.xlu2 %915  ;;  %v926_v36 = vadd.f32 %v925_v35, %v901_v33  ;;  %v937_v35 = vsel %vm920_vm5, %v2703_v7, 0.0 }
 0x184   : > { %v1073_v54 = vpop.permute.xlu0 %1072  ;;  %v918_v25 = vsel %vm895_vm4, %v2720_v21, 0.0 }
 0x185   : > { %v951_v41 = vadd.f32 %v950_v38, %v926_v36  ;;  %v1075_v60 = vsel %vm1070_vm10, %v1073_v54, 0.0  ;;  %v784_v36 = vsel %vm753_vm2, %v2712_v16, 0.0 }
 0x187   : > { %v976_v43 = vadd.f32 %v975_v39, %v951_v41 }
 0x188   : > { %v844_v15 = vpop.permute.xlu1 %843 }
 0x189   : > { %v846_v45 = vsel %vm753_vm2, %v844_v15, 0.0 }
 0x18c   : > { %v1023_v26 = vpop.permute.xlu2 %1022 }
 0x18d   : > { %v1025_v52 = vsel %vm1020_vm9, %v1023_v26, 0.0 }
 0x191   : > { %v2716_v18 = vpop.permute.xlu1 %959 }
 0x192   : > { %v962_v39 = vsel %vm945_vm6, %v2716_v18, 0.0 }
 0x195   : > { %v2739_v34 = vpop.permute.xlu2 %978 }
 0x19a   : > { %v2718_v20 = vpop.permute.xlu1 %928 }
 0x19b   : > { %v931_v51 = vsel %vm920_vm5, %v2718_v20, 0.0 }
 0x19e   : > { %v966_v44 = vpop.permute.xlu2 %965 }
 0x19f   : > { %v968_v7 = vsel %vm945_vm6, %v966_v44, 0.0 }
 0x1a3   : > { %v998_v24 = vpop.permute.xlu1 %997 }
 0x1a4   : > { %v1000_v42 = vsel %vm995_vm8, %v998_v24, 0.0 }
 0x1a5   : > { %v1001_v46 = vadd.f32 %v1000_v42, %v976_v43 }
 0x1a7   : > { %v1026_v56 = vadd.f32 %v1025_v52, %v1001_v46  ;;  %v1060_v63 = vpop.permute.xlu2 %1059  ;;  %v987_v46 = vsel %vm970_vm7, %v2714_v17, 0.0  ;;  %v1037_v17 = vsel %vm1020_vm9, %v2745_v37, 0.0  ;;  %v981_v37 = vsel %vm970_vm7, %v2739_v34, 0.0 }
 0x1a8   : > { %v1062_v20 = vsel %vm1045_vm11, %v1060_v63, 0.0 }
 0x1ac   : > { %v2734_v31 = vpop.permute.xlu1 %1009 }
 0x1b0   : > { %v1029_v14 = vpop.permute.xlu2 %1028 }
 0x1b1   : > { %v1031_v34 = vsel %vm1020_vm9, %v1029_v14, 0.0 }
 0x1b5   : > { %v941_v40 = vpop.permute.xlu1 %940 }
 0x1b6   : > { %v943_v0 = vsel %vm920_vm5, %v941_v40, 0.0  ;;  %v881_v40 = vsel %vm870_vm3, %v2710_v11, 0.0  ;;  %v1012_v11 = vsel %vm995_vm8, %v2734_v31, 0.0 }
 0x1b9   : > { %v1016_v19 = vpop.permute.xlu2 %1015 }
 0x1ba   : > { %v866_v47 = vpop.f32.mrf.mxu0  ;;  %v1018_v54 = vsel %vm995_vm8, %v1016_v19, 0.0  ;;  %v1054_v19 = vpop.permute.xlu0 %1053 }
 0x1bb   : > { %v867_v48 = vadd.f32 %v866_v47, %v846_v45 }
 0x1bd   : > { %v894_v53 = vadd.f32 %v893_v49, %v867_v48  ;;  %v906_v48 = vsel %vm895_vm4, %v2708_v10, 0.0  ;;  %v956_v10 = vsel %vm945_vm6, %v2732_v30, 0.0  ;;  %vm1355_vm4 = vcmask 523264  }
 0x1be   : > { %v1048_v55 = vpop.permute.xlu1 %1047 }
 0x1bf   : > { %v1050_v57 = vsel %vm1045_vm11, %v1048_v55, 0.0  ;;  %v919_v28 = vadd.f32 %v918_v25, %v894_v53 }
 0x1c0   : > { %v1051_v59 = vadd.f32 %v1050_v57, %v1026_v56 }
 0x1c1   : > { %v944_v21 = vadd.f32 %v943_v0, %v919_v28 }
 0x1c2   : > { %v1076_v61 = vadd.f32 %v1075_v60, %v1051_v59  ;;  %v868_v62 = vpop.f32.mrf.mxu0  ;;  %v1079_v8 = vpop.permute.xlu2 %1078 }
 0x1c3   : > { %v969_v18 = vadd.f32 %v968_v7, %v944_v21  ;;  %v1081_v0 = vsel %vm1070_vm10, %v1079_v8, 0.0 }
 0x1c4   : > { %v1095_v4 = vmul.f32 %v1076_v61, %v2772_v58 }
 0x1c6   : > { %v2780_v6 = vadd.f32 %v1095_v4, %v2776_v2 }
 0x1c7   : > { %v1004_v9 = vpop.permute.xlu1 %1003 }
 0x1c8   : > { %v1097_v12 = vsel %vm760_vm0, %v2780_v6, -inf }
 0x1c9   : > { %1098 = vmax.xlane.f32.xlu0 %v1097_v12  ;;  %v1006_v12 = vsel %vm995_vm8, %v1004_v9, 0.0  ;;  %v1056_v9 = vsel %vm1045_vm11, %v1054_v19, 0.0 }
 0x1cb   : > { %v1091_v61 = vpop.permute.xlu2 %1090 }
 0x1cc   : > { %v1093_v25 = vsel %vm1070_vm10, %v1091_v61, 0.0 }
 0x1d0   : > { %v991_v15 = vpop.permute.xlu1 %990 }
 0x1d1   : > { %v993_v43 = vsel %vm970_vm7, %v991_v15, 0.0 }
 0x1d2   : > { %v994_v44 = vadd.f32 %v993_v43, %v969_v18 }
 0x1d4   : > { %v1019_v59 = vadd.f32 %v1018_v54, %v994_v44 }
 0x1d9   : > { %v838_v23 = vpop.f32.mrf.mxu3  ;;  %v1085_v24 = vpop.permute.xlu1 %1084 }
 0x1da   : > { %v839_v26 = vadd.f32 %v838_v23, %v818_v22  ;;  %v1087_v30 = vsel %vm1070_vm10, %v1085_v24, 0.0 }
 0x1dc   : > { %v888_v29 = vadd.f32 %v887_v27, %v839_v26 }
 0x1de   : > { %v913_v33 = vadd.f32 %v912_v32, %v888_v29 }
 0x1e0   : > { %v938_v5 = vadd.f32 %v937_v35, %v913_v33  ;;  %v810_v38 = vpop.f32.mrf.mxu2 }
 0x1e1   : > { %v811_v41 = vadd.f32 %v810_v38, %v784_v36  ;;  %v840_v42 = vpop.f32.mrf.mxu3 }
 0x1e2   : > { %v963_v16 = vadd.f32 %v962_v39, %v938_v5  ;;  %v1041_v45 = vpop.permute.xlu1 %1040 }
 0x1e3   : > { %v882_v47 = vadd.f32 %v881_v40, %v811_v41  ;;  %v1043_v55 = vsel %vm1020_vm9, %v1041_v45, 0.0 }
 0x1e4   : > { %v988_v49 = vadd.f32 %v987_v46, %v963_v16  ;;  %v1044_v1 = vadd.f32 %v1043_v55, %v1019_v59 }
 0x1e5   : > { %v907_v50 = vadd.f32 %v906_v48, %v882_v47 }
 0x1e6   : > { %v1013_v52 = vadd.f32 %v1012_v11, %v988_v49 }
 0x1e7   : > { %v932_v53 = vadd.f32 %v931_v51, %v907_v50 }
 0x1e8   : > { %v1038_v31 = vadd.f32 %v1037_v17, %v1013_v52  ;;  %v812_v56 = vpop.f32.mrf.mxu2 }
 0x1e9   : > { %v957_v57 = vadd.f32 %v956_v10, %v932_v53 }
 0x1ea   : > { %v1063_v60 = vadd.f32 %v1062_v20, %v1038_v31 }
 0x1eb   : > { %v982_v62 = vadd.f32 %v981_v37, %v957_v57  ;;  %v1066_v4 = vpop.permute.xlu1 %1065 }
 0x1ec   : > { %v1088_v15 = vadd.f32 %v1087_v30, %v1063_v60  ;;  %v1068_v63 = vsel %vm1045_vm11, %v1066_v4, 0.0 }
 0x1ed   : > { %v1069_v22 = vadd.f32 %v1068_v63, %v1044_v1  ;;  %v1007_v23 = vadd.f32 %v1006_v12, %v982_v62 }
 0x1ee   : > { %v1171_v24 = vmul.f32 %v1088_v15, %v2772_v58 }
 0x1ef   : > { %v1094_v26 = vadd.f32 %v1093_v25, %v1069_v22  ;;  %v1032_v27 = vadd.f32 %v1031_v34, %v1007_v23 }
 0x1f0   : > { %v1172_v28 = vadd.f32 %v1171_v24, %v2776_v2 }
 0x1f1   : > { %v1057_v29 = vadd.f32 %v1056_v9, %v1032_v27  ;;  %v1209_v32 = vmul.f32 %v1094_v26, %v2772_v58  ;;  %v2893_v9 = vld [vmem:[%s3034_s2] sm:$0xff] }
 0x1f2   : > { %v1173_v14 = vsel %vm760_vm0, %v1172_v28, -inf }
 0x1f3   : > { %1174 = vmax.xlane.f32.xlu1 %v1173_v14  ;;  %v1082_v33 = vadd.f32 %v1081_v0, %v1057_v29  ;;  %v1210_v5 = vadd.f32 %v1209_v32, %v2776_v2  ;;  %v1247_v0 = vperm.slane %v2893_v9, 0 }
 0x1f5   : > { %v1111_v35 = vmul.f32 %v1082_v33, %v2772_v58  ;;  %v1211_v38 = vsel %vm760_vm0, %v1210_v5, -inf  ;;  %v702_v58 = vld [vmem:[%s2605_s21] sm:$0xf]  ;;  %s2383_s21 = smov 96  }
 0x1f6   : > { %v1128_v40 = vunpack.c.l.b16 %v702_v58  ;;  %v1156_v17 = vsel %vm1135_vm13, %v702_v58, 0 }
 0x1f7   : > { %v1112_v21 = vadd.f32 %v1111_v35, %v2776_v2  ;;  %1165 = vmatpush.bf16.msrb.mxu2 %v1156_v17  ;;  %v1279_v17 = vperm.slane %v2893_v9, 1 }
 0x1f8   : > { %v1129_v43 = vpack.c.b16 %v1128_v40, %v1128_v40 }
 0x1f9   : > { %v1113_v36 = vsel %vm760_vm0, %v1112_v21, -inf }
 0x1fa   : > { %1114 = vmax.xlane.f32.xlu2 %v1113_v36 }
 0x202   : > { %1212 = vmax.xlane.f32.xlu2 %v1211_v38  ;;  %v2385_v38 = vmov 32.0  }
 0x23c   : > { %v1099_v39 = vpop.xlane.xlu0 %1098 }
 0x23d   : > { %v1100_v13 = vsub.f32 %v2780_v6, %v1099_v39 }
 0x23f   : > { %v1101_v8 = vmul.f32 1.442695, %v1100_v13 }
 0x241   : > { %1969 = vpow2.f32 %v1101_v8 }
 0x247   : > { %v1970_v41 = vpop.eup %1969 }
 0x248   : > { %v1103_v42 = vsel %vm760_vm0, %v1970_v41, 0.0 }
 0x249   : > { %1104 = vadd.xlane.f32.xlu0 %v1103_v42 }
 0x25d   : > { %1187 = vrot.lane.b32.xlu0 %v1129_v43, %s2382_s22 }
 0x266   : > { %v1175_v45 = vpop.xlane.xlu1 %1174 }
 0x267   : > { %v1176_v47 = vsub.f32 %v1172_v28, %v1175_v45  ;;  %v1754_v45 = vld [vmem:[#allocation11] sm:$0xff] }
 0x269   : > { %v1177_v11 = vmul.f32 1.442695, %v1176_v47  ;;  %v1758_v47 = vld [vmem:[%s3035_s15 + $0x10] sm:$0xff] }
 0x26d   : > { %v1115_v7 = vpop.xlane.xlu2 %1114 }
 0x26e   : > { %v1116_v16 = vsub.f32 %v1112_v21, %v1115_v7 }
 0x270   : > { %v1117_v2 = vmul.f32 1.442695, %v1116_v16 }
 0x272   : > { %1971 = vpow2.f32 %v1117_v2  ;;  %v1755_v2 = vld [vmem:[#allocation11 + $0x8] sm:$0xff] }
 0x275   : > { %v1213_v46 = vpop.xlane.xlu2 %1212 }
 0x276   : > { %v1214_v18 = vsub.f32 %v1210_v5, %v1213_v46  ;;  %v1759_v46 = vld [vmem:[%s3035_s15 + $0x18] sm:$0xff] }
 0x277   : > { %1363 = vmatpush.bf16.msra.mxu2 %v1759_v46 }
 0x278   : > { %v1972_v6 = vpop.eup %1971  ;;  %v1215_v48 = vmul.f32 1.442695, %v1214_v18 }
 0x279   : > { %v1119_v49 = vsel %vm760_vm0, %v1972_v6, 0.0 }
 0x27a   : > { %1973 = vpow2.f32 %v1215_v48  ;;  %1120 = vadd.xlane.f32.xlu2 %v1119_v49 }
 0x27b   : > { %1975 = vpow2.f32 %v1177_v11  ;;  %1364 = vmatpush.bf16.msra.mxu2 %v1758_v47 }
 0x280   : > { %v1974_v44 = vpop.eup %1973 }
 0x281   : > { %v1217_v50 = vsel %vm760_vm0, %v1974_v44, 0.0  ;;  %v1976_v51 = vpop.eup %1975 }
 0x282   : > { %1218 = vadd.xlane.f32.xlu1 %v1217_v50  ;;  %v1179_v52 = vsel %vm760_vm0, %v1976_v51, 0.0 }
 0x28a   : > { %1180 = vadd.xlane.f32.xlu1 %v1179_v52 }
 0x292   : > { %1130 = vrot.lane.b32.xlu2 %v1129_v43, %s2383_s21  ;;  %s3037_s21 = sld [smem:[#allocation38_spill]] }
 0x298   : > { %s2221_s14 = scalar_lea.hbm %s3037_s21, 32 }
 0x2a3   : > { %1225 = vrot.lane.b32.xlu1 %v1129_v43, %s2384_s8  ;;  %s1433_s8 = scalar_lea.hbm %s3037_s21, %s1760_s24 }
 0x2a4   : > { %s1436_s13 = sshll.u32 %s1433_s8, 4  ;;  %s1437_s13 = int_to_ptr.hbm [resolvable:$true] %s1436_s13 }
 0x2a5   : > { %s2215_s2 = sshra.s32 %s1437_s13, 4  ;;  %s2216_s2 = int_to_ptr.hbm [resolvable:$true] %s2215_s2 }
 0x2a6   : > { %s2217_s27 = scalar_lea.hbm %s2216_s2, 16  ;;  %p2222_p9 = scmp.lt.s32.totalorder %s2216_s2, %s3037_s21 }
 0x2a7   : > { %p2218_p1 = scmp.ne.s32.totalorder %s2216_s2, %s2217_s27  ;;  %p2223_p11 = scmp.lt.s32.totalorder %s2221_s14, %s2217_s27 }
 0x2a9   : > { %p2219_p4 = pnand %p2218_p1, %p2540_p7  ;;  %p2224_p12 = por %p2223_p11, %p2222_p9 }
 0x2ab   : > { %p2220_p8 = pneg %p2219_p4 }
 0x2ad   : > { %p2225_p13 = pnand %p2224_p12, %p2220_p8 }
 0x2bc   : > { %v1105_v53 = vpop.xlane.xlu0 %1104 }
 0x2bd   : > { %1977 = vrcp.f32 %v1105_v53 }
 0x2c3   : > { %v1978_v10 = vpop.eup %1977 }
 0x2c4   : > { %v1107_v54 = vmul.f32 %v1978_v10, %v1970_v41  ;;  %v1281_v10 = vperm.slane %v2893_v9, 2 }
 0x2c6   : > { %v1108_v31 = vpack.c.bf16 %v1107_v54, %v1107_v54 }
 0x2c8   : > { %1110 = vst.msk [vmem:[%s2873_s18] sm:$0xf] %vm1109_vm14, %v1108_v31  ;;  %1714 = vmatmul.msk.bf16.vlgmr.msrb.gmra.mxu2 %vm760_vm0, %v1108_v31 }
 0x2cf   : > { %v1188_v55 = vpop.permute.xlu0 %1187 }
 0x2d0   : > { %v1193_v56 = vsel %vm1135_vm13, %v1188_v55, 0 }
 0x2d1   : > { %1202 = vmatpush.bf16.msrb.mxu3 %v1193_v56 }
 0x2ed   : > { %v1121_v20 = vpop.xlane.xlu2 %1120 }
 0x2ee   : > { %1979 = vrcp.f32 %v1121_v20  ;;  %v1757_v20 = vld [vmem:[%s3035_s15 + $0x8] sm:$0xff] }
 0x2ef   : > { %1365 = vmatpush.bf16.msra.mxu2 %v1757_v20 }
 0x2f4   : > { %v1980_v57 = vpop.eup %1979 }
 0x2f5   : > { %v1123_v59 = vmul.f32 %v1980_v57, %v1972_v6  ;;  %v1131_v37 = vpop.permute.xlu2 %1130  ;;  %v1219_v60 = vpop.xlane.xlu1 %1218  ;;  %v1756_v57 = vld [vmem:[%s3035_s15] sm:$0xff] }
 0x2f6   : > { %1981 = vrcp.f32 %v1219_v60  ;;  %v1137_v61 = vsel %vm1135_vm13, %v1131_v37, 0  ;;  %1366 = vmatpush.bf16.msra.mxu2 %v1756_v57 }
 0x2f7   : > { %1146 = vmatpush.bf16.msrb.mxu1 %v1137_v61  ;;  %v1124_v30 = vpack.c.bf16 %v1123_v59, %v1123_v59  ;;  %v1968_v59 = vld [vmem:[#allocation13] ss:$0 sm:$0xff] }
 0x2f9   : > { %1712 = vst.msk [vmem:[%s2873_s18 + $0x4] sm:$0xf] %vm1109_vm14, %v1124_v30 }
 0x2fa   : > { %1713 = vmatmul.msk.bf16.vlgmr.msrb.gmra.mxu1 %vm760_vm0, %v1124_v30 }
 0x2fb   : > { %1313 = vmatpush.bf16.msra.mxu1 %v1755_v2 }
 0x2fc   : > { %v1982_v62 = vpop.eup %1981 }
 0x2fd   : > { %v1221_v1 = vmul.f32 %v1982_v62, %v1974_v44  ;;  %v1181_v4 = vpop.xlane.xlu1 %1180 }
 0x2fe   : > { %1983 = vrcp.f32 %v1181_v4 }
 0x2ff   : > { %v1222_v12 = vpack.c.bf16 %v1221_v1, %v1221_v1  ;;  %1985 = vrcp.f32 %v2385_v38  ;;  %1314 = vmatpush.bf16.msra.mxu1 %v1754_v45  ;;  %v1330_v1 = vperm.slane %v2893_v9, 3 }
 0x301   : > { %1717 = vst.msk [vmem:[%s2873_s18 + $0xc] sm:$0xf] %vm1109_vm14, %v1222_v12 }
 0x304   : > { %v1984_v15 = vpop.eup %1983 }
 0x305   : > { %v1183_v63 = vmul.f32 %v1984_v15, %v1976_v51  ;;  %v1986_v39 = vpop.eup %1985 }
 0x306   : > { %v1254_v13 = vmul.f32 32.0, %v1986_v39  ;;  %vm1258_vm15 = vweird.f32 %v1986_v39 }
 0x307   : > { %v1184_v19 = vpack.c.bf16 %v1183_v63, %v1183_v63 }
 0x308   : > { %v1255_v8 = vsub.f32 1.0, %v1254_v13 }
 0x309   : > { %1715 = vst.msk [vmem:[%s2873_s18 + $0x8] sm:$0xf] %vm1109_vm14, %v1184_v19  ;;  %1716 = vmatmul.msk.bf16.vlgmr.msrb.gmra.mxu3 %vm760_vm0, %v1184_v19 }
 0x30a   : > { %v1256_v41 = vmul.f32 %v1986_v39, %v1255_v8 }
 0x30c   : > { %v1257_v42 = vadd.f32 %v1986_v39, %v1256_v41 }
 0x30e   : > { %v2898_v58 = vsel %vm1258_vm15, %v1986_v39, %v1257_v42 }
 0x315   : > { %v1226_v22 = vpop.permute.xlu1 %1225 }
 0x316   : > { %v1231_v23 = vsel %vm1135_vm13, %v1226_v22, 0 }
 0x317   : > { %1240 = vmatpush.bf16.msra.mxu0 %v1231_v23 }
 0x31a   : > { %1718 = vmatmul.msk.bf16.vlgmr.msra.gmra.mxu0 %vm760_vm0, %v1222_v12 }
 0x34b   : > { %v1167_v34 = vpop.f32.mrf.mxu2 }
 0x353   : > { %v1169_v25 = vpop.f32.mrf.mxu2 }
 0x377   : > { %v1148_v24 = vpop.f32.mrf.mxu1 }
 0x378   : > { %v1168_v28 = vadd.f32 %v1167_v34, %v1148_v24 }
 0x37f   : > { %v1150_v26 = vpop.f32.mrf.mxu1 }
 0x38c   : > { %v1204_v27 = vpop.f32.mrf.mxu3 }
 0x38d   : > { %v1208_v32 = vadd.f32 %v1204_v27, %v1168_v28 }
 0x394   : > { %v1206_v29 = vpop.f32.mrf.mxu3 }
 0x397   : > { %v1242_v14 = vpop.f32.mrf.mxu0 }
 0x398   : > { %v1246_v33 = vadd.f32 %v1242_v14, %v1208_v32 }
 0x39a   : > { %v1248_v35 = vadd.f32 %v1247_v0, %v1246_v33 }
 0x39c   : > { %v1249_v21 = vadd.f32 %v1248_v35, %v2643_v3 }
 0x39e   : > { %v1250_v36 = vsel %vm728_vm1, %v1249_v21, 0.0 }
 0x39f   : > { %v1244_v5 = vpop.f32.mrf.mxu0  ;;  %1251 = vadd.xlane.f32.xlu0 %v1250_v36 }
 0x412   : > { %v1252_v40 = vpop.xlane.xlu0 %1251 }
 0x413   : > { %v1260_v7 = vmul.f32 %v2898_v58, %v1252_v40 }
 0x415   : > { %v1261_v43 = vsub.f32 %v1249_v21, %v1260_v7 }
 0x417   : > { %v1262_v16 = vmul.f32 %v1261_v43, %v1261_v43 }
 0x419   : > { %v1263_v3 = vsel %vm728_vm1, %v1262_v16, 0.0 }
 0x41a   : > { %1264 = vadd.xlane.f32.xlu2 %v1263_v3 }
 0x48d   : > { %v1265_v18 = vpop.xlane.xlu2 %1264 }
 0x48e   : > { %v1266_v6 = vmul.f32 %v1265_v18, %v2898_v58 }
 0x490   : > { %v1267_v48 = vadd.f32 1e-05, %v1266_v6 }
 0x492   : > { %1987 = vrsqrt.f32 %v1267_v48  ;;  %vm1274_vm2 = vweird.f32 %v1267_v48 }
 0x498   : > { %v1988_v49 = vpop.eup %1987 }
 0x499   : > { %v1269_v11 = vmul.f32 %v1988_v49, %v1267_v48  ;;  %vm1275_vm0 = vweird.f32 %v1988_v49 }
 0x49a   : > { %vm1276_vm3 = vmor %vm1274_vm2, %vm1275_vm0 }
 0x49b   : > { %v1270_v44 = vmul.f32 %v1988_v49, %v1269_v11 }
 0x49d   : > { %v1271_v50 = vmul.f32 0.5, %v1270_v44 }
 0x49f   : > { %v1272_v51 = vsub.f32 1.5, %v1271_v50 }
 0x4a1   : > { %v1273_v52 = vmul.f32 %v1988_v49, %v1272_v51 }
 0x4a3   : > { %v1277_v53 = vsel %vm1276_vm3, %v1988_v49, %v1273_v52 }
 0x4a4   : > { %v1278_v54 = vmul.f32 %v1277_v53, %v1261_v43 }
 0x4a6   : > { %v1280_v31 = vmul.f32 %v1279_v17, %v1278_v54 }
 0x4a8   : > { %v1282_v55 = vadd.f32 %v1281_v10, %v1280_v31 }
 0x4aa   : > { %v1283_v56 = vpack.c.bf16 %v1282_v55, %v1282_v55 }
 0x4ac   : > { %1727 = vmatmul.msk.bf16.vlgmr.msra.gmra.mxu1 %vm728_vm1, %v1283_v56 }
 0x529   : > { %v1316_v37 = vpop.f32.mrf.mxu1 }
 0x52a   : > { %v1317_v60 = vadd.f32 %v1968_v59, %v1316_v37 }
 0x52c   : > { %v1320_v61 = vmax.f32 %v1317_v60, 0.0 }
 0x52e   : > { %v1321_v30 = vpack.c.bf16 %v1320_v61, %v1320_v61 }
 0x530   : > { %1744 = vmatmul.msk.bf16.vlgmr.msra.gmra.mxu2 %vm1355_vm4, %v1321_v30 }
 0x531   : > { %v1318_v62 = vpop.f32.mrf.mxu1 }
 0x5b3   : > { %v1368_v4 = vpop.f32.mrf.mxu2 }
 0x5b4   : > { %v1369_v12 = vadd.f32 %v1368_v4, %v1330_v1 }
 0x5b6   : > { %v1372_v15 = vadd.f32 %v1369_v12, %v1282_v55 }
 0x5b8   : > { %v1373_v63 = vsel %vm728_vm1, %v1372_v15, 0.0 }
 0x5b9   : > { %1374 = vadd.xlane.f32.xlu1 %v1373_v63 }
 0x5bb   : > { %v1370_v19 = vpop.f32.mrf.mxu2 }
 0x62c   : > { %v1375_v22 = vpop.xlane.xlu1 %1374 }
 0x62d   : > { %v1376_v23 = vmul.f32 %v1375_v22, %v2898_v58 }
 0x62f   : > { %v1377_v34 = vsub.f32 %v1372_v15, %v1376_v23 }
 0x631   : > { %v1378_v25 = vmul.f32 %v1377_v34, %v1377_v34 }
 0x633   : > { %v1379_v24 = vsel %vm728_vm1, %v1378_v25, 0.0 }
 0x634   : > { %1380 = vadd.xlane.f32.xlu0 %v1379_v24 }
 0x635   : > { %2228 = shalt.err (!%p2225_p13)
}
 0x636   : > { %s2386_s18 = smov 4   ;;  %s1695_s4 = sshll.u32 %s2596_s11, 3  ;;  %v1395_v21 = vperm.slane %v2893_v9, 4  ;;  %v1397_v38 = vperm.slane %v2893_v9, 5 }
 0x637   : > { %1782 = dma.vmem_to_hbm [thread:$0]  (%p2540_p7), %s1435_s12, 256, %s1437_s13, %s1406_s16, %s2382_s22, %s2382_s22, %s2386_s18  }
 0x638   : > { %s1747_s20 = sshll.u32 %s2323_s28, 3  ;;  %s3038_s1 = sld [smem:[#allocation37_spill]] }
 0x639   : > { %s677_s8 = scalar_lea.vmem [#allocation14], %s1695_s4  ;;  %s1401_s28 = scalar_lea.sflag [#allocation4], %s2596_s11 }
 0x63a   : > { %s1419_s12 = sshll.u32 %s677_s8, 4  ;;  %s1420_s12 = int_to_ptr.vmem [resolvable:$true] %s1419_s12 }
 0x63e   : > { %s1417_s17 = scalar_lea.hbm %s3038_s1, %s1747_s20  ;;  %s2249_s25 = scalar_lea.hbm %s3038_s1, 16 }
 0x63f   : > { %s1421_s13 = sshll.u32 %s1417_s17, 4  ;;  %s1422_s13 = int_to_ptr.hbm [resolvable:$true] %s1421_s13 }
 0x640   : > { %s2243_s16 = sshra.s32 %s1422_s13, 4  ;;  %s2244_s16 = int_to_ptr.hbm [resolvable:$true] %s2243_s16 }
 0x641   : > { %s2245_s2 = scalar_lea.hbm %s2244_s16, 8  ;;  %p2250_p10 = scmp.lt.s32.totalorder %s2244_s16, %s3038_s1 }
 0x642   : > { %p2246_p0 = scmp.ne.s32.totalorder %s2244_s16, %s2245_s2  ;;  %p2251_p2 = scmp.lt.s32.totalorder %s2249_s25, %s2245_s2 }
 0x644   : > { %p2247_p3 = pnand %p2246_p0, %p2540_p7  ;;  %p2252_p1 = por %p2251_p2, %p2250_p10 }
 0x646   : > { %p2248_p5 = pneg %p2247_p3 }
 0x648   : > { %p2253_p4 = pnand %p2252_p1, %p2248_p5 }
 0x6a7   : > { %v1381_v26 = vpop.xlane.xlu0 %1380 }
 0x6a8   : > { %v1382_v27 = vmul.f32 %v1381_v26, %v2898_v58 }
 0x6aa   : > { %v1383_v28 = vadd.f32 1e-05, %v1382_v27 }
 0x6ac   : > { %1989 = vrsqrt.f32 %v1383_v28  ;;  %vm1390_vm6 = vweird.f32 %v1383_v28 }
 0x6b2   : > { %v1990_v29 = vpop.eup %1989 }
 0x6b3   : > { %v1385_v32 = vmul.f32 %v1990_v29, %v1383_v28  ;;  %vm1391_vm5 = vweird.f32 %v1990_v29 }
 0x6b4   : > { %vm1392_vm7 = vmor %vm1390_vm6, %vm1391_vm5 }
 0x6b5   : > { %v1386_v0 = vmul.f32 %v1990_v29, %v1385_v32 }
 0x6b7   : > { %v1387_v14 = vmul.f32 0.5, %v1386_v0 }
 0x6b9   : > { %v1388_v33 = vsub.f32 1.5, %v1387_v14 }
 0x6bb   : > { %v1389_v35 = vmul.f32 %v1990_v29, %v1388_v33 }
 0x6bd   : > { %v1393_v36 = vsel %vm1392_vm7, %v1990_v29, %v1389_v35 }
 0x6be   : > { %v1394_v5 = vmul.f32 %v1393_v36, %v1377_v34 }
 0x6c0   : > { %v1396_v39 = vmul.f32 %v1395_v21, %v1394_v5 }
 0x6c2   : > { %v1398_v13 = vadd.f32 %v1397_v38, %v1396_v39 }
 0x6c4   : > { %1399 = vst.msk [vmem:[%s677_s8] sm:$0xff] %vm728_vm1, %v1398_v13 }
 0x6c5   : > { %2256 = shalt.err (!%p2253_p4)
}
 0x6c6   : > { %1781 = dma.vmem_to_hbm [thread:$0]  (%p2540_p7), %s1420_s12, 128, %s1422_s13, %s1401_s28  }
 0x6c7 PF: > { %s3039_s11 = sld [smem:[#allocation24_spill]]  ;;  %p3041_p8 = scmp.ge.s32.totalorder %s2331_s30, 2 }
 0x6c9   : > { %p1809_p9 = pnand %p3041_p8, %p2502_p6 }
 0x6cb   : > { %p1810_p11 = pneg %p1809_p9 }
 0x6cd   : > { %s1451_s18 = sand.u32 1, %s3039_s11  }
 0x6ce   : > { %s1452_s4 = scalar_lea.sflag [#allocation4], %s1451_s18 }
 0x6cf   : > { %2302 = dma.done.wait (%p1810_p11), %s1452_s4, 128  }
 0x6d0   : > { %2304 = vsyncadd (%p1810_p11), %s1452_s4, 4294967168  ;;  %s1462_s20 = scalar_lea.sflag [#allocation16], %s1451_s18 }
 0x6d1   : > { %2306 = dma.done.wait (%p1810_p11), %s1462_s20, 256  }
 0x6d2   : > { %2308 = vsyncadd (%p1810_p11), %s1462_s20, 4294967040  ;;  %s40_s30 = sadd.s32 1, %s2331_s30   ;;  %s3042_s19 = sld [smem:[#allocation25_spill]] }
 0x6d3   : > { %p37_p12 = scmp.ge.s32.totalorder %s40_s30, 4   ;;  %s3043_s27 = sld [smem:[#allocation29_spill]] }
 0x6d4   : > { %s3044_s22 = sld [smem:[#allocation27_spill]]  ;;  %s3045_s25 = smov %s2315_s26 }
 0x6d5   : > { %s3047_s28 = smov %s2327_s29 }
 0x6d6   :  { %39 = sbr.rel (!%p37_p12) target bundleno = 23 (0x17), region = 188 }
 0x6d8   : > { %s3046_s26 = smov %s3042_s19 }
 0x6da   : > { %s3048_s29 = smov %s3044_s22 }
 0x6db   :  { %1468 = vsyncpa [#allocation3], 1 }
 0x6dc   :  { %1470 = vsyncpa [#allocation3 + $0x1], 1 }
 0x6dd   :  { %1471 = vsyncpa [#allocation6], 1 }
 0x6de   :  { %1473 = vsyncpa [#allocation6 + $0x1], 1 }
 0x6df   :  { %1474 = vsyncpa [#allocation9], 1 }
 0x6e0   :  { %1476 = vsyncpa [#allocation9 + $0x1], 1 }
 0x6e1   :  { %1477 = vsyncpa [#allocation12], 1 }
 0x6e2   :  { %1478 = vsyncpa [#allocation4], 1 }
 0x6e3   :  { %1480 = vsyncpa [#allocation4 + $0x1], 1 }
 0x6e4   :  { %1481 = vsyncpa [#allocation16], 1 }
 0x6e5   :  { %1483 = vsyncpa [#allocation16 + $0x1], 1 }

</bundles_post_ra>
